<compile_context>
chip_gen: v7x
topology: tpu7x:2x2x1
jax: 0.10.0
libtpu: 0.0.40
codegen_flags: <defaults>
</compile_context>

<pallas_src>
import math
from functools import partial

import jax
import jax.numpy as jnp
from jax.experimental import pallas as pl
from jax.experimental.pallas import tpu as pltpu


def _attn_kernel(x_ref, wqkv_ref, bqkv_ref, wproj_ref, bproj_ref, o_ref, *,
                 n_head: int, seq_len: int, compute_dtype):
    """One grid step (`block_b` batch rows): fused QKV projection -> batched
    multi-head softmax attention -> output projection, entirely in VMEM."""
    C = wqkv_ref.shape[0]
    T = seq_len
    M = math.prod(x_ref.shape) // C              # block_b * T rows
    Bblk = M // T
    H = n_head
    hd = C // H
    exact_f32 = jnp.dtype(compute_dtype) == jnp.dtype(jnp.float32)

    # Whatever slab shape the BlockSpec presents, compute on (M, C) rows.
    x = x_ref[...].reshape(M, C).astype(compute_dtype)

    # Fused QKV projection; weights are input-major (C, 3C) and already carry
    # the 1/sqrt(hd) softmax scale folded into the q columns (wrapper).
    qkv = jnp.dot(x, wqkv_ref[...], preferred_element_type=jnp.float32)
    qkv = (qkv + bqkv_ref[...]).astype(compute_dtype)        # single cast copy

    # Head split: one minor-dims transpose of the whole qkv block, cheap
    # sublane slices for q/k/v, then one (hd, T) <-> (T, hd) swap per tensor.
    qkv_t = jnp.swapaxes(qkv.reshape(Bblk, T, 3 * C), 1, 2)  # (Bblk, 3C, T)

    def heads(idx):                                          # -> (Bblk*H, T, hd)
        t = qkv_t[:, idx * C:(idx + 1) * C, :]               # (Bblk, C, T)
        return jnp.swapaxes(t.reshape(Bblk * H, hd, T), 1, 2)

    qh, kh, vh = heads(0), heads(1), heads(2)

    # Batched attention over all (batch, head) pairs in one MXU contraction.
    att = jnp.einsum('bqd,bkd->bqk', qh, kh,
                     preferred_element_type=jnp.float32)     # (Bblk*H, T, T)
    att = att - jnp.max(att, axis=-1, keepdims=True)
    p = jnp.exp(att)
    denom = jnp.sum(p, axis=-1, keepdims=True)
    if exact_f32:
        inv = pl.reciprocal(denom, approx=False)
    else:
        inv = pl.reciprocal(denom, approx=True)              # EUP slot
        inv = inv * (2.0 - denom * inv)                      # one Newton step
    p = p * inv

    y3 = jnp.einsum('bqk,bkd->bqd', p.astype(compute_dtype), vh,
                    preferred_element_type=jnp.float32)      # (Bblk*H, T, hd)

    # Merge heads back to (M, C) rows (inverse of the split relayout).
    y_t = jnp.swapaxes(y3.astype(compute_dtype), 1, 2)       # (Bblk*H, hd, T)
    y = jnp.swapaxes(y_t.reshape(Bblk, C, T), 1, 2).reshape(M, C)

    # Output projection (input-major (C, C)) + bias; store in the slab layout.
    out = jnp.dot(y, wproj_ref[...], preferred_element_type=jnp.float32)
    out = out + bproj_ref[...]
    o_ref[...] = out.reshape(o_ref.shape).astype(o_ref.dtype)


def _pick_block_b(batch: int, seq_len: int) -> int:
    """Largest divisor of `batch` such that block_b*T approaches ~128 MXU rows
    per grid step; keep >= 2 grid steps (v7x megacore) when the 128-row target
    cannot be met anyway."""
    target_rows = 128
    divisors = [d for d in range(1, batch + 1) if batch % d == 0]
    cap = max(1, pl.cdiv(target_rows, seq_len))
    block_b = max(d for d in divisors if d <= cap)
    if batch // block_b < 2 and batch > 1:
        smaller = [d for d in divisors if d < block_b]
        if smaller:
            cand = max(smaller)
            if cand * seq_len >= target_rows or block_b * seq_len < target_rows:
                block_b = cand
    return block_b


def _vmem_limit_bytes(block_b, seq_len, d_model, n_head, compute_dtype,
                      weight_bufs):
    """Scoped-VMEM budget derived from the actual tile / working-set sizes."""
    f32 = 4
    cb = jnp.dtype(compute_dtype).itemsize
    T, C, H = seq_len, d_model, n_head
    hd = C // H
    m = block_b * T
    io_tiles = 2 * 2 * m * C * f32                       # x / out slabs, double-buffered
    weights = weight_bufs * ((C * 3 * C + C * C) * cb + 4 * C * f32)
    work = (m * 3 * C * (f32 + cb)                       # qkv f32 acc + compute copy
            + 2 * 3 * block_b * H * T * hd * cb          # head-split relayouts
            + 3 * block_b * H * T * T * f32              # scores / probs temporaries
            + block_b * H * T * hd * (f32 + cb)          # attention outputs
            + 2 * m * C * f32)                           # merged y + projected out
    est = io_tiles + weights + work
    # Floor at the default scoped limit (32 MiB); cap with headroom below the
    # 64 MiB physical VMEM of v7x (review: never request the full 64 MiB).
    return int(min(48 * 1024 * 1024, max(32 * 1024 * 1024, 2 * est)))


def causal_self_attention(x, w_qkv, b_qkv, w_proj, b_proj, n_head, *,
                          block_b=None, compute_dtype=jnp.bfloat16):
    """x: (B, T, C); weights in PyTorch nn.Linear layout (out_feat, in_feat)."""
    B, T, C = x.shape
    H = n_head
    assert C % H == 0
    hd = C // H
    if block_b is None:
        block_b = _pick_block_b(B, T)
    assert B % block_b == 0
    grid_b = B // block_b

    # Weight prep (once, in the wrapper): transpose to input-major, fold the
    # 1/sqrt(hd) softmax scale into the q columns, cast to the MXU dtype.
    scale = 1.0 / math.sqrt(hd)
    qkv_scale = jnp.concatenate([jnp.full((C,), scale, jnp.float32),
                                 jnp.ones((2 * C,), jnp.float32)])
    w_qkv_t = (jnp.asarray(w_qkv, jnp.float32).T
               * qkv_scale[None, :]).astype(compute_dtype)          # (C, 3C)
    b_qkv2 = (jnp.asarray(b_qkv, jnp.float32) * qkv_scale).reshape(1, 3 * C)
    w_proj_t = jnp.asarray(w_proj, jnp.float32).T.astype(compute_dtype)  # (C, C)
    b_proj2 = jnp.asarray(b_proj, jnp.float32).reshape(1, C)

    kernel = partial(_attn_kernel, n_head=n_head, seq_len=T,
                     compute_dtype=compute_dtype)

    flops = int(2 * B * T * C * 3 * C              # QKV projection
                + 2 * B * H * T * T * hd * 2       # q k^T and p v
                + 2 * B * T * C * C)               # output projection
    transcendentals = int(B * H * T * T)           # softmax exp
    bytes_accessed = int(2 * B * T * C * x.dtype.itemsize
                         + (w_qkv_t.size + w_proj_t.size) * w_qkv_t.dtype.itemsize
                         + (b_qkv2.size + b_proj2.size) * 4)

    def call(lane_dense: bool, single_buffer_weights: bool):
        wmode = ({'pipeline_mode': pl.Buffered(1)}
                 if single_buffer_weights else {})
        if lane_dense:
            # Lane-dense slab: last block dim = T*C >= 128 (C=32 is not).
            x_in = x.reshape(B, 1, T * C)
            data_block = (block_b, 1, T * C)
        else:
            x_in = x
            data_block = (block_b, T, C)
        data_spec = pl.BlockSpec(data_block, lambda b: (b, 0, 0))
        y = pl.pallas_call(
            kernel,
            out_shape=jax.ShapeDtypeStruct(x_in.shape, x.dtype),
            grid_spec=pltpu.PrefetchScalarGridSpec(
                num_scalar_prefetch=0,
                grid=(grid_b,),
                in_specs=[
                    data_spec,                                          # x slab
                    pl.BlockSpec((C, 3 * C), lambda b: (0, 0), **wmode),  # Wqkv^T
                    pl.BlockSpec((1, 3 * C), lambda b: (0, 0), **wmode),  # bqkv
                    pl.BlockSpec((C, C), lambda b: (0, 0), **wmode),      # Wproj^T
                    pl.BlockSpec((1, C), lambda b: (0, 0), **wmode),      # bproj
                ],
                out_specs=data_spec,
            ),
            compiler_params=pltpu.CompilerParams(
                dimension_semantics=("parallel",),
                vmem_limit_bytes=_vmem_limit_bytes(
                    block_b, T, C, H, compute_dtype,
                    weight_bufs=1 if single_buffer_weights else 2)),
            cost_estimate=pl.CostEstimate(
                flops=flops, transcendentals=transcendentals,
                bytes_accessed=bytes_accessed),
        )(x_in, w_qkv_t, b_qkv2, w_proj_t, b_proj2)
        return y.reshape(B, T, C)

    # Preferred configuration first; degrade gracefully if the installed
    # jax/Mosaic rejects single-buffered constant blocks or the lane-dense
    # slab reshape.  All configurations compute identical values.
    last_exc = None
    for lane_dense, single_buf in ((True, True), (True, False),
                                   (False, True), (False, False)):
        try:
            return call(lane_dense, single_buf)
        except Exception as exc:          # lowering rejection -> next config
            last_exc = exc
    raise last_exc


def reference_forward(x, w_qkv, b_qkv, w_proj, b_proj, n_head):
    """Plain-JAX transcription of the PyTorch forward (eval mode), f32."""
    B, T, C = x.shape
    hd = C // n_head
    qkv = x @ w_qkv.T + b_qkv                       # (B, T, 3C)
    q, k, v = jnp.split(qkv, 3, axis=2)

    def heads(t):                                   # (B, T, C) -> (B, H, T, hd)
        return t.reshape(B, T, n_head, hd).transpose(0, 2, 1, 3)

    q, k, v = heads(q), heads(k), heads(v)
    att = (q @ jnp.swapaxes(k, -2, -1)) * (1.0 / math.sqrt(hd))
    att = jax.nn.softmax(att, axis=-1)
    y = att @ v                                     # (B, H, T, hd)
    y = y.transpose(0, 2, 1, 3).reshape(B, T, C)
    return y @ w_proj.T + b_proj


if __name__ == "__main__":
    # Small shapes consistent with the module: B=2, T=8, d_model=32, nhead=4.
    B, T, C, NHEAD = 2, 8, 32, 4

    key = jax.random.PRNGKey(0)
    kx, k1, k2, k3, k4 = jax.random.split(key, 5)

    x = jax.random.normal(kx, (B, T, C), dtype=jnp.float32)

    # Deterministic params, PyTorch nn.Linear-style uniform(+-1/sqrt(fan_in)).
    bound = 1.0 / math.sqrt(C)
    w_qkv = jax.random.uniform(k1, (3 * C, C), jnp.float32, -bound, bound)
    b_qkv = jax.random.uniform(k2, (3 * C,), jnp.float32, -bound, bound)
    w_proj = jax.random.uniform(k3, (C, C), jnp.float32, -bound, bound)
    b_proj = jax.random.uniform(k4, (C,), jnp.float32, -bound, bound)

    ref = reference_forward(x, w_qkv, b_qkv, w_proj, b_proj, NHEAD)

    # Default (performance) path: bf16 MXU inputs, f32 accumulation/softmax.
    out = causal_self_attention(x, w_qkv, b_qkv, w_proj, b_proj, NHEAD)
    out = jax.block_until_ready(out)
    assert out.shape == (B, T, C)
    err_bf16 = jnp.max(jnp.abs(out - ref))
    assert jnp.allclose(out, ref, atol=3e-2, rtol=3e-2), \
        f"bf16 path max abs err {err_bf16}"

    # Full-f32 path for a tight numerical check of the kernel structure.
    out_f32 = causal_self_attention(x, w_qkv, b_qkv, w_proj, b_proj, NHEAD,
                                    compute_dtype=jnp.float32)
    out_f32 = jax.block_until_ready(out_f32)
    err_f32 = jnp.max(jnp.abs(out_f32 - ref))
    assert jnp.allclose(out_f32, ref, atol=2e-5, rtol=2e-5), \
        f"f32 path max abs err {err_f32}"

    print("KERNEL_OK")
</pallas_src>

<mosaic_0001>
module attributes {stable_mosaic.version = 11 : i64} {
  func.func @_attn_kernel(%arg0: i32, %arg1: memref<1x1x256xf32, #tpu.memory_space<vmem>>, %arg2: memref<32x96xbf16, #tpu.memory_space<vmem>>, %arg3: memref<1x96xf32, #tpu.memory_space<vmem>>, %arg4: memref<32x32xbf16, #tpu.memory_space<vmem>>, %arg5: memref<1x32xf32, #tpu.memory_space<vmem>>, %arg6: memref<1x1x256xf32, #tpu.memory_space<vmem>>) attributes {dimension_semantics = [#tpu.dimension_semantics<parallel>], iteration_bounds = array<i64: 2>, scalar_prefetch = 0 : i64, scratch_operands = 0 : i64, tpu.core_type = #tpu.core_type<tc>, window_params = [{transform_indices = @transform_0, window_bounds = array<i64: 1, 1, 256>}, {pipeline_mode = #tpu.pipeline_mode<synchronous>, transform_indices = @transform_1, window_bounds = array<i64: 32, 96>}, {pipeline_mode = #tpu.pipeline_mode<synchronous>, transform_indices = @transform_2, window_bounds = array<i64: 1, 96>}, {pipeline_mode = #tpu.pipeline_mode<synchronous>, transform_indices = @transform_3, window_bounds = array<i64: 32, 32>}, {pipeline_mode = #tpu.pipeline_mode<synchronous>, transform_indices = @transform_4, window_bounds = array<i64: 1, 32>}, {transform_indices = @transform_5, window_bounds = array<i64: 1, 1, 256>}]} {
    %c0 = arith.constant 0 : index
    %c0_0 = arith.constant 0 : index
    %c0_1 = arith.constant 0 : index
    %0 = vector.load %arg1[%c0, %c0_0, %c0_1] : memref<1x1x256xf32, #tpu.memory_space<vmem>>, vector<1x1x256xf32>
    %1 = vector.shape_cast %0 : vector<1x1x256xf32> to vector<8x32xf32>
    %2 = arith.truncf %1 : vector<8x32xf32> to vector<8x32xbf16>
    %c0_2 = arith.constant 0 : index
    %c0_3 = arith.constant 0 : index
    %3 = vector.load %arg2[%c0_2, %c0_3] : memref<32x96xbf16, #tpu.memory_space<vmem>>, vector<32x96xbf16>
    %cst = arith.constant dense<0.000000e+00> : vector<8x96xf32>
    %4 = tpu.matmul %2, %3, %cst {dimension_numbers = #tpu.dot_dimension_numbers<[1], [0], [0], [1], [0, 0, 1, 1], [], []>} : vector<8x32xbf16>, vector<32x96xbf16>, vector<8x96xf32> -> vector<8x96xf32>
    %c0_4 = arith.constant 0 : index
    %c0_5 = arith.constant 0 : index
    %5 = vector.load %arg3[%c0_4, %c0_5] : memref<1x96xf32, #tpu.memory_space<vmem>>, vector<1x96xf32>
    %6 = vector.broadcast %5 : vector<1x96xf32> to vector<8x96xf32>
    %7 = arith.addf %4, %6 : vector<8x96xf32>
    %8 = arith.truncf %7 : vector<8x96xf32> to vector<8x96xbf16>
    %9 = vector.shape_cast %8 : vector<8x96xbf16> to vector<1x8x96xbf16>
    %10 = tpu.transpose %9, [0, 2, 1] : vector<1x8x96xbf16> -> vector<1x96x8xbf16>
    %11 = vector.extract_strided_slice %10 {offsets = [0, 0, 0], sizes = [1, 32, 8], strides = [1, 1, 1]} : vector<1x96x8xbf16> to vector<1x32x8xbf16>
    %12 = vector.shape_cast %11 : vector<1x32x8xbf16> to vector<4x8x8xbf16>
    %13 = tpu.transpose %12, [0, 2, 1] : vector<4x8x8xbf16> -> vector<4x8x8xbf16>
    %14 = vector.extract_strided_slice %10 {offsets = [0, 32, 0], sizes = [1, 32, 8], strides = [1, 1, 1]} : vector<1x96x8xbf16> to vector<1x32x8xbf16>
    %15 = vector.shape_cast %14 : vector<1x32x8xbf16> to vector<4x8x8xbf16>
    %16 = tpu.transpose %15, [0, 2, 1] : vector<4x8x8xbf16> -> vector<4x8x8xbf16>
    %17 = vector.extract_strided_slice %10 {offsets = [0, 64, 0], sizes = [1, 32, 8], strides = [1, 1, 1]} : vector<1x96x8xbf16> to vector<1x32x8xbf16>
    %18 = vector.shape_cast %17 : vector<1x32x8xbf16> to vector<4x8x8xbf16>
    %19 = tpu.transpose %18, [0, 2, 1] : vector<4x8x8xbf16> -> vector<4x8x8xbf16>
    "tpu.trace_start"() <{level = 10 : i32, message = "bqd,bkd->bqk"}> : () -> ()
    %cst_6 = arith.constant dense<0.000000e+00> : vector<4x8x8xf32>
    %20 = tpu.matmul %13, %16, %cst_6 {dimension_numbers = #tpu.dot_dimension_numbers<[2], [2], [1], [1], [0, 0, 0, 1, 1, 1], [0], [0]>} : vector<4x8x8xbf16>, vector<4x8x8xbf16>, vector<4x8x8xf32> -> vector<4x8x8xf32>
    "tpu.trace_stop"() : () -> ()
    %cst_7 = arith.constant dense<0xFF800000> : vector<4x8xf32>
    %21 = vector.multi_reduction <maximumf>, %20, %cst_7 [2] : vector<4x8x8xf32> to vector<4x8xf32>
    %22 = vector.shape_cast %21 : vector<4x8xf32> to vector<4x8x1xf32>
    %23 = vector.broadcast %22 : vector<4x8x1xf32> to vector<4x8x8xf32>
    %24 = arith.subf %20, %23 : vector<4x8x8xf32>
    %25 = math.exp %24 : vector<4x8x8xf32>
    %cst_8 = arith.constant dense<0.000000e+00> : vector<4x8xf32>
    %26 = vector.multi_reduction <add>, %25, %cst_8 [2] : vector<4x8x8xf32> to vector<4x8xf32>
    %27 = vector.shape_cast %26 : vector<4x8xf32> to vector<4x8x1xf32>
    %28 = tpu.reciprocal %27 {approx = true} : vector<4x8x1xf32> -> vector<4x8x1xf32>
    %29 = arith.mulf %27, %28 : vector<4x8x1xf32>
    %cst_9 = arith.constant 2.000000e+00 : f32
    %30 = vector.broadcast %cst_9 : f32 to vector<4x8x1xf32>
    %31 = arith.subf %30, %29 : vector<4x8x1xf32>
    %32 = arith.mulf %28, %31 : vector<4x8x1xf32>
    %33 = vector.broadcast %32 : vector<4x8x1xf32> to vector<4x8x8xf32>
    %34 = arith.mulf %25, %33 : vector<4x8x8xf32>
    %35 = arith.truncf %34 : vector<4x8x8xf32> to vector<4x8x8xbf16>
    "tpu.trace_start"() <{level = 10 : i32, message = "bqk,bkd->bqd"}> : () -> ()
    %cst_10 = arith.constant dense<0.000000e+00> : vector<4x8x8xf32>
    %36 = tpu.matmul %35, %19, %cst_10 {dimension_numbers = #tpu.dot_dimension_numbers<[2], [1], [1], [2], [0, 0, 0, 1, 1, 2], [0], [0]>} : vector<4x8x8xbf16>, vector<4x8x8xbf16>, vector<4x8x8xf32> -> vector<4x8x8xf32>
    "tpu.trace_stop"() : () -> ()
    %37 = arith.truncf %36 : vector<4x8x8xf32> to vector<4x8x8xbf16>
    %38 = tpu.transpose %37, [0, 2, 1] : vector<4x8x8xbf16> -> vector<4x8x8xbf16>
    %39 = vector.shape_cast %38 : vector<4x8x8xbf16> to vector<1x32x8xbf16>
    %40 = tpu.transpose %39, [0, 2, 1] : vector<1x32x8xbf16> -> vector<1x8x32xbf16>
    %41 = vector.shape_cast %40 : vector<1x8x32xbf16> to vector<8x32xbf16>
    %c0_11 = arith.constant 0 : index
    %c0_12 = arith.constant 0 : index
    %42 = vector.load %arg4[%c0_11, %c0_12] : memref<32x32xbf16, #tpu.memory_space<vmem>>, vector<32x32xbf16>
    %cst_13 = arith.constant dense<0.000000e+00> : vector<8x32xf32>
    %43 = tpu.matmul %41, %42, %cst_13 {dimension_numbers = #tpu.dot_dimension_numbers<[1], [0], [0], [1], [0, 0, 1, 1], [], []>} : vector<8x32xbf16>, vector<32x32xbf16>, vector<8x32xf32> -> vector<8x32xf32>
    %c0_14 = arith.constant 0 : index
    %c0_15 = arith.constant 0 : index
    %44 = vector.load %arg5[%c0_14, %c0_15] : memref<1x32xf32, #tpu.memory_space<vmem>>, vector<1x32xf32>
    %45 = vector.broadcast %44 : vector<1x32xf32> to vector<8x32xf32>
    %46 = arith.addf %43, %45 : vector<8x32xf32>
    %47 = vector.shape_cast %46 : vector<8x32xf32> to vector<1x1x256xf32>
    %c0_16 = arith.constant 0 : index
    %c0_17 = arith.constant 0 : index
    %c0_18 = arith.constant 0 : index
    %48 = vector.load %arg6[%c0_16, %c0_17, %c0_18] : memref<1x1x256xf32, #tpu.memory_space<vmem>>, vector<1x1x256xf32>
    tpu.vector_store %arg6[%c0_16, %c0_17, %c0_18], %47 {strides = array<i32>} : memref<1x1x256xf32, #tpu.memory_space<vmem>>, vector<1x1x256xf32>,
    return
  }
  func.func @transform_0(%arg0: i32) -> (i32, i32, i32) {
    %c0_i32 = arith.constant 0 : i32
    %c0_i32_0 = arith.constant 0 : i32
    %c0_i32_1 = arith.constant 0 : i32
    return %arg0, %c0_i32, %c0_i32_0 : i32, i32, i32
  }
  func.func @transform_1(%arg0: i32) -> (i32, i32) {
    %c0_i32 = arith.constant 0 : i32
    %c0_i32_0 = arith.constant 0 : i32
    %c0_i32_1 = arith.constant 0 : i32
    return %c0_i32, %c0_i32_0 : i32, i32
  }
  func.func @transform_2(%arg0: i32) -> (i32, i32) {
    %c0_i32 = arith.constant 0 : i32
    %c0_i32_0 = arith.constant 0 : i32
    %c0_i32_1 = arith.constant 0 : i32
    return %c0_i32, %c0_i32_0 : i32, i32
  }
  func.func @transform_3(%arg0: i32) -> (i32, i32) {
    %c0_i32 = arith.constant 0 : i32
    %c0_i32_0 = arith.constant 0 : i32
    %c0_i32_1 = arith.constant 0 : i32
    return %c0_i32, %c0_i32_0 : i32, i32
  }
  func.func @transform_4(%arg0: i32) -> (i32, i32) {
    %c0_i32 = arith.constant 0 : i32
    %c0_i32_0 = arith.constant 0 : i32
    %c0_i32_1 = arith.constant 0 : i32
    return %c0_i32, %c0_i32_0 : i32, i32
  }
  func.func @transform_5(%arg0: i32) -> (i32, i32, i32) {
    %c0_i32 = arith.constant 0 : i32
    %c0_i32_0 = arith.constant 0 : i32
    %c0_i32_1 = arith.constant 0 : i32
    return %arg0, %c0_i32, %c0_i32_0 : i32, i32, i32
  }
}

module attributes {stable_mosaic.version = 11 : i64} {
  func.func @_attn_kernel(%arg0: i32, %arg1: memref<1x1x256xf32, #tpu.memory_space<vmem>>, %arg2: memref<32x96xbf16, #tpu.memory_space<vmem>>, %arg3: memref<1x96xf32, #tpu.memory_space<vmem>>, %arg4: memref<32x32xbf16, #tpu.memory_space<vmem>>, %arg5: memref<1x32xf32, #tpu.memory_space<vmem>>, %arg6: memref<1x1x256xf32, #tpu.memory_space<vmem>>) attributes {dimension_semantics = [#tpu.dimension_semantics<parallel>], iteration_bounds = array<i64: 2>, scalar_prefetch = 0 : i64, scratch_operands = 0 : i64, tpu.core_type = #tpu.core_type<tc>, window_params = [{transform_indices = @transform_0, window_bounds = array<i64: 1, 1, 256>}, {pipeline_mode = #tpu.pipeline_mode<synchronous>, transform_indices = @transform_1, window_bounds = array<i64: 32, 96>}, {pipeline_mode = #tpu.pipeline_mode<synchronous>, transform_indices = @transform_2, window_bounds = array<i64: 1, 96>}, {pipeline_mode = #tpu.pipeline_mode<synchronous>, transform_indices = @transform_3, window_bounds = array<i64: 32, 32>}, {pipeline_mode = #tpu.pipeline_mode<synchronous>, transform_indices = @transform_4, window_bounds = array<i64: 1, 32>}, {transform_indices = @transform_5, window_bounds = array<i64: 1, 1, 256>}]} {
    %c0 = arith.constant 0 : index
    %c0_0 = arith.constant 0 : index
    %c0_1 = arith.constant 0 : index
    %0 = vector.load %arg1[%c0, %c0_0, %c0_1] : memref<1x1x256xf32, #tpu.memory_space<vmem>>, vector<1x1x256xf32>
    %1 = vector.shape_cast %0 : vector<1x1x256xf32> to vector<8x32xf32>
    %2 = arith.truncf %1 : vector<8x32xf32> to vector<8x32xbf16>
    %c0_2 = arith.constant 0 : index
    %c0_3 = arith.constant 0 : index
    %3 = vector.load %arg2[%c0_2, %c0_3] : memref<32x96xbf16, #tpu.memory_space<vmem>>, vector<32x96xbf16>
    %cst = arith.constant dense<0.000000e+00> : vector<8x96xf32>
    %4 = tpu.matmul %2, %3, %cst {dimension_numbers = #tpu.dot_dimension_numbers<[1], [0], [0], [1], [0, 0, 1, 1], [], []>} : vector<8x32xbf16>, vector<32x96xbf16>, vector<8x96xf32> -> vector<8x96xf32>
    %c0_4 = arith.constant 0 : index
    %c0_5 = arith.constant 0 : index
    %5 = vector.load %arg3[%c0_4, %c0_5] : memref<1x96xf32, #tpu.memory_space<vmem>>, vector<1x96xf32>
    %6 = vector.broadcast %5 : vector<1x96xf32> to vector<8x96xf32>
    %7 = arith.addf %4, %6 : vector<8x96xf32>
    %8 = arith.truncf %7 : vector<8x96xf32> to vector<8x96xbf16>
    %9 = vector.shape_cast %8 : vector<8x96xbf16> to vector<1x8x96xbf16>
    %10 = tpu.transpose %9, [0, 2, 1] : vector<1x8x96xbf16> -> vector<1x96x8xbf16>
    %11 = vector.extract_strided_slice %10 {offsets = [0, 0, 0], sizes = [1, 32, 8], strides = [1, 1, 1]} : vector<1x96x8xbf16> to vector<1x32x8xbf16>
    %12 = vector.shape_cast %11 : vector<1x32x8xbf16> to vector<4x8x8xbf16>
    %13 = tpu.transpose %12, [0, 2, 1] : vector<4x8x8xbf16> -> vector<4x8x8xbf16>
    %14 = vector.extract_strided_slice %10 {offsets = [0, 32, 0], sizes = [1, 32, 8], strides = [1, 1, 1]} : vector<1x96x8xbf16> to vector<1x32x8xbf16>
    %15 = vector.shape_cast %14 : vector<1x32x8xbf16> to vector<4x8x8xbf16>
    %16 = tpu.transpose %15, [0, 2, 1] : vector<4x8x8xbf16> -> vector<4x8x8xbf16>
    %17 = vector.extract_strided_slice %10 {offsets = [0, 64, 0], sizes = [1, 32, 8], strides = [1, 1, 1]} : vector<1x96x8xbf16> to vector<1x32x8xbf16>
    %18 = vector.shape_cast %17 : vector<1x32x8xbf16> to vector<4x8x8xbf16>
    %19 = tpu.transpose %18, [0, 2, 1] : vector<4x8x8xbf16> -> vector<4x8x8xbf16>
    "tpu.trace_start"() <{level = 10 : i32, message = "bqd,bkd->bqk"}> : () -> ()
    %cst_6 = arith.constant dense<0.000000e+00> : vector<4x8x8xf32>
    %20 = tpu.matmul %13, %16, %cst_6 {dimension_numbers = #tpu.dot_dimension_numbers<[2], [2], [1], [1], [0, 0, 0, 1, 1, 1], [0], [0]>} : vector<4x8x8xbf16>, vector<4x8x8xbf16>, vector<4x8x8xf32> -> vector<4x8x8xf32>
    "tpu.trace_stop"() : () -> ()
    %cst_7 = arith.constant dense<0xFF800000> : vector<4x8xf32>
    %21 = vector.multi_reduction <maximumf>, %20, %cst_7 [2] : vector<4x8x8xf32> to vector<4x8xf32>
    %22 = vector.shape_cast %21 : vector<4x8xf32> to vector<4x8x1xf32>
    %23 = vector.broadcast %22 : vector<4x8x1xf32> to vector<4x8x8xf32>
    %24 = arith.subf %20, %23 : vector<4x8x8xf32>
    %25 = math.exp %24 : vector<4x8x8xf32>
    %cst_8 = arith.constant dense<0.000000e+00> : vector<4x8xf32>
    %26 = vector.multi_reduction <add>, %25, %cst_8 [2] : vector<4x8x8xf32> to vector<4x8xf32>
    %27 = vector.shape_cast %26 : vector<4x8xf32> to vector<4x8x1xf32>
    %28 = tpu.reciprocal %27 {approx = true} : vector<4x8x1xf32> -> vector<4x8x1xf32>
    %29 = arith.mulf %27, %28 : vector<4x8x1xf32>
    %cst_9 = arith.constant 2.000000e+00 : f32
    %30 = vector.broadcast %cst_9 : f32 to vector<4x8x1xf32>
    %31 = arith.subf %30, %29 : vector<4x8x1xf32>
    %32 = arith.mulf %28, %31 : vector<4x8x1xf32>
    %33 = vector.broadcast %32 : vector<4x8x1xf32> to vector<4x8x8xf32>
    %34 = arith.mulf %25, %33 : vector<4x8x8xf32>
    %35 = arith.truncf %34 : vector<4x8x8xf32> to vector<4x8x8xbf16>
    "tpu.trace_start"() <{level = 10 : i32, message = "bqk,bkd->bqd"}> : () -> ()
    %cst_10 = arith.constant dense<0.000000e+00> : vector<4x8x8xf32>
    %36 = tpu.matmul %35, %19, %cst_10 {dimension_numbers = #tpu.dot_dimension_numbers<[2], [1], [1], [2], [0, 0, 0, 1, 1, 2], [0], [0]>} : vector<4x8x8xbf16>, vector<4x8x8xbf16>, vector<4x8x8xf32> -> vector<4x8x8xf32>
    "tpu.trace_stop"() : () -> ()
    %37 = arith.truncf %36 : vector<4x8x8xf32> to vector<4x8x8xbf16>
    %38 = tpu.transpose %37, [0, 2, 1] : vector<4x8x8xbf16> -> vector<4x8x8xbf16>
    %39 = vector.shape_cast %38 : vector<4x8x8xbf16> to vector<1x32x8xbf16>
    %40 = tpu.transpose %39, [0, 2, 1] : vector<1x32x8xbf16> -> vector<1x8x32xbf16>
    %41 = vector.shape_cast %40 : vector<1x8x32xbf16> to vector<8x32xbf16>
    %c0_11 = arith.constant 0 : index
    %c0_12 = arith.constant 0 : index
    %42 = vector.load %arg4[%c0_11, %c0_12] : memref<32x32xbf16, #tpu.memory_space<vmem>>, vector<32x32xbf16>
    %cst_13 = arith.constant dense<0.000000e+00> : vector<8x32xf32>
    %43 = tpu.matmul %41, %42, %cst_13 {dimension_numbers = #tpu.dot_dimension_numbers<[1], [0], [0], [1], [0, 0, 1, 1], [], []>} : vector<8x32xbf16>, vector<32x32xbf16>, vector<8x32xf32> -> vector<8x32xf32>
    %c0_14 = arith.constant 0 : index
    %c0_15 = arith.constant 0 : index
    %44 = vector.load %arg5[%c0_14, %c0_15] : memref<1x32xf32, #tpu.memory_space<vmem>>, vector<1x32xf32>
    %45 = vector.broadcast %44 : vector<1x32xf32> to vector<8x32xf32>
    %46 = arith.addf %43, %45 : vector<8x32xf32>
    %47 = vector.shape_cast %46 : vector<8x32xf32> to vector<1x1x256xf32>
    %c0_16 = arith.constant 0 : index
    %c0_17 = arith.constant 0 : index
    %c0_18 = arith.constant 0 : index
    %48 = vector.load %arg6[%c0_16, %c0_17, %c0_18] : memref<1x1x256xf32, #tpu.memory_space<vmem>>, vector<1x1x256xf32>
    tpu.vector_store %arg6[%c0_16, %c0_17, %c0_18], %47 {strides = array<i32>} : memref<1x1x256xf32, #tpu.memory_space<vmem>>, vector<1x1x256xf32>,
    return
  }
  func.func @transform_0(%arg0: i32) -> (i32, i32, i32) {
    %c0_i32 = arith.constant 0 : i32
    %c0_i32_0 = arith.constant 0 : i32
    %c0_i32_1 = arith.constant 0 : i32
    return %arg0, %c0_i32, %c0_i32_0 : i32, i32, i32
  }
  func.func @transform_1(%arg0: i32) -> (i32, i32) {
    %c0_i32 = arith.constant 0 : i32
    %c0_i32_0 = arith.constant 0 : i32
    %c0_i32_1 = arith.constant 0 : i32
    return %c0_i32, %c0_i32_0 : i32, i32
  }
  func.func @transform_2(%arg0: i32) -> (i32, i32) {
    %c0_i32 = arith.constant 0 : i32
    %c0_i32_0 = arith.constant 0 : i32
    %c0_i32_1 = arith.constant 0 : i32
    return %c0_i32, %c0_i32_0 : i32, i32
  }
  func.func @transform_3(%arg0: i32) -> (i32, i32) {
    %c0_i32 = arith.constant 0 : i32
    %c0_i32_0 = arith.constant 0 : i32
    %c0_i32_1 = arith.constant 0 : i32
    return %c0_i32, %c0_i32_0 : i32, i32
  }
  func.func @transform_4(%arg0: i32) -> (i32, i32) {
    %c0_i32 = arith.constant 0 : i32
    %c0_i32_0 = arith.constant 0 : i32
    %c0_i32_1 = arith.constant 0 : i32
    return %c0_i32, %c0_i32_0 : i32, i32
  }
  func.func @transform_5(%arg0: i32) -> (i32, i32, i32) {
    %c0_i32 = arith.constant 0 : i32
    %c0_i32_0 = arith.constant 0 : i32
    %c0_i32_1 = arith.constant 0 : i32
    return %arg0, %c0_i32, %c0_i32_0 : i32, i32, i32
  }
}

module attributes {stable_mosaic.version = 11 : i64} {
  func.func @_attn_kernel(%arg0: i32, %arg1: memref<1x8x32xf32, #tpu.memory_space<vmem>>, %arg2: memref<32x96xbf16, #tpu.memory_space<vmem>>, %arg3: memref<1x96xf32, #tpu.memory_space<vmem>>, %arg4: memref<32x32xbf16, #tpu.memory_space<vmem>>, %arg5: memref<1x32xf32, #tpu.memory_space<vmem>>, %arg6: memref<1x8x32xf32, #tpu.memory_space<vmem>>) attributes {dimension_semantics = [#tpu.dimension_semantics<parallel>], iteration_bounds = array<i64: 2>, scalar_prefetch = 0 : i64, scratch_operands = 0 : i64, tpu.core_type = #tpu.core_type<tc>, window_params = [{transform_indices = @transform_0, window_bounds = array<i64: 1, 8, 32>}, {pipeline_mode = #tpu.pipeline_mode<synchronous>, transform_indices = @transform_1, window_bounds = array<i64: 32, 96>}, {pipeline_mode = #tpu.pipeline_mode<synchronous>, transform_indices = @transform_2, window_bounds = array<i64: 1, 96>}, {pipeline_mode = #tpu.pipeline_mode<synchronous>, transform_indices = @transform_3, window_bounds = array<i64: 32, 32>}, {pipeline_mode = #tpu.pipeline_mode<synchronous>, transform_indices = @transform_4, window_bounds = array<i64: 1, 32>}, {transform_indices = @transform_5, window_bounds = array<i64: 1, 8, 32>}]} {
    %c0 = arith.constant 0 : index
    %c0_0 = arith.constant 0 : index
    %c0_1 = arith.constant 0 : index
    %0 = vector.load %arg1[%c0, %c0_0, %c0_1] : memref<1x8x32xf32, #tpu.memory_space<vmem>>, vector<1x8x32xf32>
    %1 = vector.shape_cast %0 : vector<1x8x32xf32> to vector<8x32xf32>
    %2 = arith.truncf %1 : vector<8x32xf32> to vector<8x32xbf16>
    %c0_2 = arith.constant 0 : index
    %c0_3 = arith.constant 0 : index
    %3 = vector.load %arg2[%c0_2, %c0_3] : memref<32x96xbf16, #tpu.memory_space<vmem>>, vector<32x96xbf16>
    %cst = arith.constant dense<0.000000e+00> : vector<8x96xf32>
    %4 = tpu.matmul %2, %3, %cst {dimension_numbers = #tpu.dot_dimension_numbers<[1], [0], [0], [1], [0, 0, 1, 1], [], []>} : vector<8x32xbf16>, vector<32x96xbf16>, vector<8x96xf32> -> vector<8x96xf32>
    %c0_4 = arith.constant 0 : index
    %c0_5 = arith.constant 0 : index
    %5 = vector.load %arg3[%c0_4, %c0_5] : memref<1x96xf32, #tpu.memory_space<vmem>>, vector<1x96xf32>
    %6 = vector.broadcast %5 : vector<1x96xf32> to vector<8x96xf32>
    %7 = arith.addf %4, %6 : vector<8x96xf32>
    %8 = arith.truncf %7 : vector<8x96xf32> to vector<8x96xbf16>
    %9 = vector.shape_cast %8 : vector<8x96xbf16> to vector<1x8x96xbf16>
    %10 = tpu.transpose %9, [0, 2, 1] : vector<1x8x96xbf16> -> vector<1x96x8xbf16>
    %11 = vector.extract_strided_slice %10 {offsets = [0, 0, 0], sizes = [1, 32, 8], strides = [1, 1, 1]} : vector<1x96x8xbf16> to vector<1x32x8xbf16>
    %12 = vector.shape_cast %11 : vector<1x32x8xbf16> to vector<4x8x8xbf16>
    %13 = tpu.transpose %12, [0, 2, 1] : vector<4x8x8xbf16> -> vector<4x8x8xbf16>
    %14 = vector.extract_strided_slice %10 {offsets = [0, 32, 0], sizes = [1, 32, 8], strides = [1, 1, 1]} : vector<1x96x8xbf16> to vector<1x32x8xbf16>
    %15 = vector.shape_cast %14 : vector<1x32x8xbf16> to vector<4x8x8xbf16>
    %16 = tpu.transpose %15, [0, 2, 1] : vector<4x8x8xbf16> -> vector<4x8x8xbf16>
    %17 = vector.extract_strided_slice %10 {offsets = [0, 64, 0], sizes = [1, 32, 8], strides = [1, 1, 1]} : vector<1x96x8xbf16> to vector<1x32x8xbf16>
    %18 = vector.shape_cast %17 : vector<1x32x8xbf16> to vector<4x8x8xbf16>
    %19 = tpu.transpose %18, [0, 2, 1] : vector<4x8x8xbf16> -> vector<4x8x8xbf16>
    "tpu.trace_start"() <{level = 10 : i32, message = "bqd,bkd->bqk"}> : () -> ()
    %cst_6 = arith.constant dense<0.000000e+00> : vector<4x8x8xf32>
    %20 = tpu.matmul %13, %16, %cst_6 {dimension_numbers = #tpu.dot_dimension_numbers<[2], [2], [1], [1], [0, 0, 0, 1, 1, 1], [0], [0]>} : vector<4x8x8xbf16>, vector<4x8x8xbf16>, vector<4x8x8xf32> -> vector<4x8x8xf32>
    "tpu.trace_stop"() : () -> ()
    %cst_7 = arith.constant dense<0xFF800000> : vector<4x8xf32>
    %21 = vector.multi_reduction <maximumf>, %20, %cst_7 [2] : vector<4x8x8xf32> to vector<4x8xf32>
    %22 = vector.shape_cast %21 : vector<4x8xf32> to vector<4x8x1xf32>
    %23 = vector.broadcast %22 : vector<4x8x1xf32> to vector<4x8x8xf32>
    %24 = arith.subf %20, %23 : vector<4x8x8xf32>
    %25 = math.exp %24 : vector<4x8x8xf32>
    %cst_8 = arith.constant dense<0.000000e+00> : vector<4x8xf32>
    %26 = vector.multi_reduction <add>, %25, %cst_8 [2] : vector<4x8x8xf32> to vector<4x8xf32>
    %27 = vector.shape_cast %26 : vector<4x8xf32> to vector<4x8x1xf32>
    %28 = tpu.reciprocal %27 {approx = true} : vector<4x8x1xf32> -> vector<4x8x1xf32>
    %29 = arith.mulf %27, %28 : vector<4x8x1xf32>
    %cst_9 = arith.constant 2.000000e+00 : f32
    %30 = vector.broadcast %cst_9 : f32 to vector<4x8x1xf32>
    %31 = arith.subf %30, %29 : vector<4x8x1xf32>
    %32 = arith.mulf %28, %31 : vector<4x8x1xf32>
    %33 = vector.broadcast %32 : vector<4x8x1xf32> to vector<4x8x8xf32>
    %34 = arith.mulf %25, %33 : vector<4x8x8xf32>
    %35 = arith.truncf %34 : vector<4x8x8xf32> to vector<4x8x8xbf16>
    "tpu.trace_start"() <{level = 10 : i32, message = "bqk,bkd->bqd"}> : () -> ()
    %cst_10 = arith.constant dense<0.000000e+00> : vector<4x8x8xf32>
    %36 = tpu.matmul %35, %19, %cst_10 {dimension_numbers = #tpu.dot_dimension_numbers<[2], [1], [1], [2], [0, 0, 0, 1, 1, 2], [0], [0]>} : vector<4x8x8xbf16>, vector<4x8x8xbf16>, vector<4x8x8xf32> -> vector<4x8x8xf32>
    "tpu.trace_stop"() : () -> ()
    %37 = arith.truncf %36 : vector<4x8x8xf32> to vector<4x8x8xbf16>
    %38 = tpu.transpose %37, [0, 2, 1] : vector<4x8x8xbf16> -> vector<4x8x8xbf16>
    %39 = vector.shape_cast %38 : vector<4x8x8xbf16> to vector<1x32x8xbf16>
    %40 = tpu.transpose %39, [0, 2, 1] : vector<1x32x8xbf16> -> vector<1x8x32xbf16>
    %41 = vector.shape_cast %40 : vector<1x8x32xbf16> to vector<8x32xbf16>
    %c0_11 = arith.constant 0 : index
    %c0_12 = arith.constant 0 : index
    %42 = vector.load %arg4[%c0_11, %c0_12] : memref<32x32xbf16, #tpu.memory_space<vmem>>, vector<32x32xbf16>
    %cst_13 = arith.constant dense<0.000000e+00> : vector<8x32xf32>
    %43 = tpu.matmul %41, %42, %cst_13 {dimension_numbers = #tpu.dot_dimension_numbers<[1], [0], [0], [1], [0, 0, 1, 1], [], []>} : vector<8x32xbf16>, vector<32x32xbf16>, vector<8x32xf32> -> vector<8x32xf32>
    %c0_14 = arith.constant 0 : index
    %c0_15 = arith.constant 0 : index
    %44 = vector.load %arg5[%c0_14, %c0_15] : memref<1x32xf32, #tpu.memory_space<vmem>>, vector<1x32xf32>
    %45 = vector.broadcast %44 : vector<1x32xf32> to vector<8x32xf32>
    %46 = arith.addf %43, %45 : vector<8x32xf32>
    %47 = vector.shape_cast %46 : vector<8x32xf32> to vector<1x8x32xf32>
    %c0_16 = arith.constant 0 : index
    %c0_17 = arith.constant 0 : index
    %c0_18 = arith.constant 0 : index
    %48 = vector.load %arg6[%c0_16, %c0_17, %c0_18] : memref<1x8x32xf32, #tpu.memory_space<vmem>>, vector<1x8x32xf32>
    tpu.vector_store %arg6[%c0_16, %c0_17, %c0_18], %47 {strides = array<i32>} : memref<1x8x32xf32, #tpu.memory_space<vmem>>, vector<1x8x32xf32>,
    return
  }
  func.func @transform_0(%arg0: i32) -> (i32, i32, i32) {
    %c0_i32 = arith.constant 0 : i32
    %c0_i32_0 = arith.constant 0 : i32
    %c0_i32_1 = arith.constant 0 : i32
    return %arg0, %c0_i32, %c0_i32_0 : i32, i32, i32
  }
  func.func @transform_1(%arg0: i32) -> (i32, i32) {
    %c0_i32 = arith.constant 0 : i32
    %c0_i32_0 = arith.constant 0 : i32
    %c0_i32_1 = arith.constant 0 : i32
    return %c0_i32, %c0_i32_0 : i32, i32
  }
  func.func @transform_2(%arg0: i32) -> (i32, i32) {
    %c0_i32 = arith.constant 0 : i32
    %c0_i32_0 = arith.constant 0 : i32
    %c0_i32_1 = arith.constant 0 : i32
    return %c0_i32, %c0_i32_0 : i32, i32
  }
  func.func @transform_3(%arg0: i32) -> (i32, i32) {
    %c0_i32 = arith.constant 0 : i32
    %c0_i32_0 = arith.constant 0 : i32
    %c0_i32_1 = arith.constant 0 : i32
    return %c0_i32, %c0_i32_0 : i32, i32
  }
  func.func @transform_4(%arg0: i32) -> (i32, i32) {
    %c0_i32 = arith.constant 0 : i32
    %c0_i32_0 = arith.constant 0 : i32
    %c0_i32_1 = arith.constant 0 : i32
    return %c0_i32, %c0_i32_0 : i32, i32
  }
  func.func @transform_5(%arg0: i32) -> (i32, i32, i32) {
    %c0_i32 = arith.constant 0 : i32
    %c0_i32_0 = arith.constant 0 : i32
    %c0_i32_1 = arith.constant 0 : i32
    return %arg0, %c0_i32, %c0_i32_0 : i32, i32, i32
  }
}

module attributes {stable_mosaic.version = 11 : i64} {
  func.func @_attn_kernel(%arg0: i32, %arg1: memref<1x8x32xf32, #tpu.memory_space<vmem>>, %arg2: memref<32x96xbf16, #tpu.memory_space<vmem>>, %arg3: memref<1x96xf32, #tpu.memory_space<vmem>>, %arg4: memref<32x32xbf16, #tpu.memory_space<vmem>>, %arg5: memref<1x32xf32, #tpu.memory_space<vmem>>, %arg6: memref<1x8x32xf32, #tpu.memory_space<vmem>>) attributes {dimension_semantics = [#tpu.dimension_semantics<parallel>], iteration_bounds = array<i64: 2>, scalar_prefetch = 0 : i64, scratch_operands = 0 : i64, tpu.core_type = #tpu.core_type<tc>, window_params = [{transform_indices = @transform_0, window_bounds = array<i64: 1, 8, 32>}, {pipeline_mode = #tpu.pipeline_mode<synchronous>, transform_indices = @transform_1, window_bounds = array<i64: 32, 96>}, {pipeline_mode = #tpu.pipeline_mode<synchronous>, transform_indices = @transform_2, window_bounds = array<i64: 1, 96>}, {pipeline_mode = #tpu.pipeline_mode<synchronous>, transform_indices = @transform_3, window_bounds = array<i64: 32, 32>}, {pipeline_mode = #tpu.pipeline_mode<synchronous>, transform_indices = @transform_4, window_bounds = array<i64: 1, 32>}, {transform_indices = @transform_5, window_bounds = array<i64: 1, 8, 32>}]} {
    %c0 = arith.constant 0 : index
    %c0_0 = arith.constant 0 : index
    %c0_1 = arith.constant 0 : index
    %0 = vector.load %arg1[%c0, %c0_0, %c0_1] : memref<1x8x32xf32, #tpu.memory_space<vmem>>, vector<1x8x32xf32>
    %1 = vector.shape_cast %0 : vector<1x8x32xf32> to vector<8x32xf32>
    %2 = arith.truncf %1 : vector<8x32xf32> to vector<8x32xbf16>
    %c0_2 = arith.constant 0 : index
    %c0_3 = arith.constant 0 : index
    %3 = vector.load %arg2[%c0_2, %c0_3] : memref<32x96xbf16, #tpu.memory_space<vmem>>, vector<32x96xbf16>
    %cst = arith.constant dense<0.000000e+00> : vector<8x96xf32>
    %4 = tpu.matmul %2, %3, %cst {dimension_numbers = #tpu.dot_dimension_numbers<[1], [0], [0], [1], [0, 0, 1, 1], [], []>} : vector<8x32xbf16>, vector<32x96xbf16>, vector<8x96xf32> -> vector<8x96xf32>
    %c0_4 = arith.constant 0 : index
    %c0_5 = arith.constant 0 : index
    %5 = vector.load %arg3[%c0_4, %c0_5] : memref<1x96xf32, #tpu.memory_space<vmem>>, vector<1x96xf32>
    %6 = vector.broadcast %5 : vector<1x96xf32> to vector<8x96xf32>
    %7 = arith.addf %4, %6 : vector<8x96xf32>
    %8 = arith.truncf %7 : vector<8x96xf32> to vector<8x96xbf16>
    %9 = vector.shape_cast %8 : vector<8x96xbf16> to vector<1x8x96xbf16>
    %10 = tpu.transpose %9, [0, 2, 1] : vector<1x8x96xbf16> -> vector<1x96x8xbf16>
    %11 = vector.extract_strided_slice %10 {offsets = [0, 0, 0], sizes = [1, 32, 8], strides = [1, 1, 1]} : vector<1x96x8xbf16> to vector<1x32x8xbf16>
    %12 = vector.shape_cast %11 : vector<1x32x8xbf16> to vector<4x8x8xbf16>
    %13 = tpu.transpose %12, [0, 2, 1] : vector<4x8x8xbf16> -> vector<4x8x8xbf16>
    %14 = vector.extract_strided_slice %10 {offsets = [0, 32, 0], sizes = [1, 32, 8], strides = [1, 1, 1]} : vector<1x96x8xbf16> to vector<1x32x8xbf16>
    %15 = vector.shape_cast %14 : vector<1x32x8xbf16> to vector<4x8x8xbf16>
    %16 = tpu.transpose %15, [0, 2, 1] : vector<4x8x8xbf16> -> vector<4x8x8xbf16>
    %17 = vector.extract_strided_slice %10 {offsets = [0, 64, 0], sizes = [1, 32, 8], strides = [1, 1, 1]} : vector<1x96x8xbf16> to vector<1x32x8xbf16>
    %18 = vector.shape_cast %17 : vector<1x32x8xbf16> to vector<4x8x8xbf16>
    %19 = tpu.transpose %18, [0, 2, 1] : vector<4x8x8xbf16> -> vector<4x8x8xbf16>
    "tpu.trace_start"() <{level = 10 : i32, message = "bqd,bkd->bqk"}> : () -> ()
    %cst_6 = arith.constant dense<0.000000e+00> : vector<4x8x8xf32>
    %20 = tpu.matmul %13, %16, %cst_6 {dimension_numbers = #tpu.dot_dimension_numbers<[2], [2], [1], [1], [0, 0, 0, 1, 1, 1], [0], [0]>} : vector<4x8x8xbf16>, vector<4x8x8xbf16>, vector<4x8x8xf32> -> vector<4x8x8xf32>
    "tpu.trace_stop"() : () -> ()
    %cst_7 = arith.constant dense<0xFF800000> : vector<4x8xf32>
    %21 = vector.multi_reduction <maximumf>, %20, %cst_7 [2] : vector<4x8x8xf32> to vector<4x8xf32>
    %22 = vector.shape_cast %21 : vector<4x8xf32> to vector<4x8x1xf32>
    %23 = vector.broadcast %22 : vector<4x8x1xf32> to vector<4x8x8xf32>
    %24 = arith.subf %20, %23 : vector<4x8x8xf32>
    %25 = math.exp %24 : vector<4x8x8xf32>
    %cst_8 = arith.constant dense<0.000000e+00> : vector<4x8xf32>
    %26 = vector.multi_reduction <add>, %25, %cst_8 [2] : vector<4x8x8xf32> to vector<4x8xf32>
    %27 = vector.shape_cast %26 : vector<4x8xf32> to vector<4x8x1xf32>
    %28 = tpu.reciprocal %27 {approx = true} : vector<4x8x1xf32> -> vector<4x8x1xf32>
    %29 = arith.mulf %27, %28 : vector<4x8x1xf32>
    %cst_9 = arith.constant 2.000000e+00 : f32
    %30 = vector.broadcast %cst_9 : f32 to vector<4x8x1xf32>
    %31 = arith.subf %30, %29 : vector<4x8x1xf32>
    %32 = arith.mulf %28, %31 : vector<4x8x1xf32>
    %33 = vector.broadcast %32 : vector<4x8x1xf32> to vector<4x8x8xf32>
    %34 = arith.mulf %25, %33 : vector<4x8x8xf32>
    %35 = arith.truncf %34 : vector<4x8x8xf32> to vector<4x8x8xbf16>
    "tpu.trace_start"() <{level = 10 : i32, message = "bqk,bkd->bqd"}> : () -> ()
    %cst_10 = arith.constant dense<0.000000e+00> : vector<4x8x8xf32>
    %36 = tpu.matmul %35, %19, %cst_10 {dimension_numbers = #tpu.dot_dimension_numbers<[2], [1], [1], [2], [0, 0, 0, 1, 1, 2], [0], [0]>} : vector<4x8x8xbf16>, vector<4x8x8xbf16>, vector<4x8x8xf32> -> vector<4x8x8xf32>
    "tpu.trace_stop"() : () -> ()
    %37 = arith.truncf %36 : vector<4x8x8xf32> to vector<4x8x8xbf16>
    %38 = tpu.transpose %37, [0, 2, 1] : vector<4x8x8xbf16> -> vector<4x8x8xbf16>
    %39 = vector.shape_cast %38 : vector<4x8x8xbf16> to vector<1x32x8xbf16>
    %40 = tpu.transpose %39, [0, 2, 1] : vector<1x32x8xbf16> -> vector<1x8x32xbf16>
    %41 = vector.shape_cast %40 : vector<1x8x32xbf16> to vector<8x32xbf16>
    %c0_11 = arith.constant 0 : index
    %c0_12 = arith.constant 0 : index
    %42 = vector.load %arg4[%c0_11, %c0_12] : memref<32x32xbf16, #tpu.memory_space<vmem>>, vector<32x32xbf16>
    %cst_13 = arith.constant dense<0.000000e+00> : vector<8x32xf32>
    %43 = tpu.matmul %41, %42, %cst_13 {dimension_numbers = #tpu.dot_dimension_numbers<[1], [0], [0], [1], [0, 0, 1, 1], [], []>} : vector<8x32xbf16>, vector<32x32xbf16>, vector<8x32xf32> -> vector<8x32xf32>
    %c0_14 = arith.constant 0 : index
    %c0_15 = arith.constant 0 : index
    %44 = vector.load %arg5[%c0_14, %c0_15] : memref<1x32xf32, #tpu.memory_space<vmem>>, vector<1x32xf32>
    %45 = vector.broadcast %44 : vector<1x32xf32> to vector<8x32xf32>
    %46 = arith.addf %43, %45 : vector<8x32xf32>
    %47 = vector.shape_cast %46 : vector<8x32xf32> to vector<1x8x32xf32>
    %c0_16 = arith.constant 0 : index
    %c0_17 = arith.constant 0 : index
    %c0_18 = arith.constant 0 : index
    %48 = vector.load %arg6[%c0_16, %c0_17, %c0_18] : memref<1x8x32xf32, #tpu.memory_space<vmem>>, vector<1x8x32xf32>
    tpu.vector_store %arg6[%c0_16, %c0_17, %c0_18], %47 {strides = array<i32>} : memref<1x8x32xf32, #tpu.memory_space<vmem>>, vector<1x8x32xf32>,
    return
  }
  func.func @transform_0(%arg0: i32) -> (i32, i32, i32) {
    %c0_i32 = arith.constant 0 : i32
    %c0_i32_0 = arith.constant 0 : i32
    %c0_i32_1 = arith.constant 0 : i32
    return %arg0, %c0_i32, %c0_i32_0 : i32, i32, i32
  }
  func.func @transform_1(%arg0: i32) -> (i32, i32) {
    %c0_i32 = arith.constant 0 : i32
    %c0_i32_0 = arith.constant 0 : i32
    %c0_i32_1 = arith.constant 0 : i32
    return %c0_i32, %c0_i32_0 : i32, i32
  }
  func.func @transform_2(%arg0: i32) -> (i32, i32) {
    %c0_i32 = arith.constant 0 : i32
    %c0_i32_0 = arith.constant 0 : i32
    %c0_i32_1 = arith.constant 0 : i32
    return %c0_i32, %c0_i32_0 : i32, i32
  }
  func.func @transform_3(%arg0: i32) -> (i32, i32) {
    %c0_i32 = arith.constant 0 : i32
    %c0_i32_0 = arith.constant 0 : i32
    %c0_i32_1 = arith.constant 0 : i32
    return %c0_i32, %c0_i32_0 : i32, i32
  }
  func.func @transform_4(%arg0: i32) -> (i32, i32) {
    %c0_i32 = arith.constant 0 : i32
    %c0_i32_0 = arith.constant 0 : i32
    %c0_i32_1 = arith.constant 0 : i32
    return %c0_i32, %c0_i32_0 : i32, i32
  }
  func.func @transform_5(%arg0: i32) -> (i32, i32, i32) {
    %c0_i32 = arith.constant 0 : i32
    %c0_i32_0 = arith.constant 0 : i32
    %c0_i32_1 = arith.constant 0 : i32
    return %arg0, %c0_i32, %c0_i32_0 : i32, i32, i32
  }
}

</mosaic_0001>

<bundles_post_ra>
// kernel: tpu_custom_call.1
= control target key start
LH: loop header
LB: loop body
LE: loop exit
PB: predicated region body
PF: predicated region fallthrough
CT: control target
= control target key end

     0   :  { %10 = vsyncpa [#allocation3], 0  ;;  %s1870_s0 = inlined_call_operand.hbm [shape: f32[2,8,32], index: 0, kind: input, shape index: {}]   ;;  %s1871_s1 = inlined_call_operand.hbm [shape: bf16[32,96], index: 1, kind: input, shape index: {}]   ;;  %s1872_s2 = inlined_call_operand.vmem [shape: f32[1,96], index: 2, kind: input, shape index: {}]   ;;  %s1873_s3 = inlined_call_operand.hbm [shape: bf16[32,32], index: 3, kind: input, shape index: {}]   ;;  %s1874_s4 = inlined_call_operand.vmem [shape: f32[1,32], index: 4, kind: input, shape index: {}]   ;;  %s1875_s5 = inlined_call_operand.hbm [shape: f32[2,8,32], index: 5, kind: output, shape index: {}]  }
   0x1   :  { %12 = vsyncpa [#allocation3 + $0x1], 0 }
   0x2   :  { %13 = vsyncpa [#allocation6], 0 }
   0x3   :  { %14 = vsyncpa [#allocation4], 0 }
   0x4   :  { %16 = vsyncpa [#allocation4 + $0x1], 0  ;;  %s1570_s18 = smov 0   ;;  %s1572_s19 = smov 0  }
   0x5   :  { %s1574_s20 = smov 0   ;;  %s1576_s21 = smov 0  }
   0x6 LB: > { %s1591_s22 = sadd.s32 4294967295, %s1530_s21   ;;  %s1150_s23 = sadd.s32 4294967294, %s1530_s21   ;;  %s1530_s21 = sphi %s1576_s21, %s1895_s21   ;;  %s1526_s20 = sphi %s1574_s20, %s1894_s20   ;;  %s1522_s19 = sphi %s1572_s19, %s1893_s19   ;;  %s1518_s18 = sphi %s1570_s18, %s1892_s18  }
   0x7   : > { %p42_p0 = scmp.ne.s32.totalorder %s1522_s19, %s1518_s18  ;;  %p1876_p1 = scmp.eq.s32.totalorder %s1591_s22, 0 }
   0x8   : > { %p156_p3 = scmp.eq.s32.totalorder %s1150_s23, 1  ;;  %p1151_p5 = scmp.ge.s32.totalorder %s1530_s21, 1 }
   0x9   : > { %p1600_p4 = por %p1876_p1, %p42_p0  ;;  %p163_p7 = scmp.lt.s32.totalorder %s1530_s21, 3 }
   0xa   : > { %p1605_p6 = por %p156_p3, %p42_p0  ;;  %s1532_s27 = smov [#allocation5]  }
   0xb   : > { %s1879_s24 = scalar_select %p1600_p4, 1, 0 }
   0xc   : > { %s1880_s25 = scalar_select %p1605_p6, 1, 0 }
   0xd   : > { %p1610_p8 = pnand %p1151_p5, %p163_p7  ;;  %s175_s28 = sshll.u32 %s1532_s27, 4  ;;  %s1614_s28 = int_to_ptr.vmem [resolvable:$true] %s175_s28 }
   0xe   : > { %s1533_s30 = smov [#allocation7]   ;;  %s1374_s9 = scalar_lea.hbm %s1871_s1, 256 }
   0xf   : > { %p1294_p9 = pneg %p1610_p8  ;;  %s191_s6 = sshll.u32 %s1533_s30, 4  ;;  %s1625_s6 = int_to_ptr.vmem [resolvable:$true] %s191_s6 }
  0x10   : > { %p1375_p12 = scmp.ne.s32.totalorder %s1871_s1, %s1374_s9  ;;  %p1381_p5 = scmp.lt.u32.totalorder %s1374_s9, %s1871_s1 }
  0x11   : > { %p1621_p11 = pnand %p1294_p9, %p1876_p1 }
  0x13   : > { %p1376_p13 = pneg %p1621_p11 }
  0x15   : > { %p1377_p0 = pnand %p1376_p13, %p1375_p12 }
  0x17   : > { %p1378_p3 = pneg %p1377_p0 }
  0x19   : > { %p1383_p7 = pnand %p1381_p5, %p1378_p3 }
  0x1b   : > { %1386 = shalt.err (!%p1383_p7)
}
  0x1c   : > { %s1387_s14 = scalar_lea.vmem %s1614_s28, 256  ;;  %p1395_p2 = scmp.lt.s32.totalorder %s1614_s28, %s1614_s28 }
  0x1d   : > { %p1388_p9 = scmp.ne.s32.totalorder %s1614_s28, %s1387_s14  ;;  %p1396_p12 = scmp.lt.s32.totalorder %s1387_s14, %s1387_s14 }
  0x1f   : > { %p1390_p10 = pnand %p1388_p9, %p1376_p13  ;;  %p1397_p0 = por %p1396_p12, %p1395_p2 }
  0x21   : > { %p1391_p1 = pneg %p1390_p10 }
  0x23   : > { %p1398_p6 = pnand %p1397_p0, %p1391_p1 }
  0x25   : > { %1401 = shalt.err (!%p1398_p6)
}
  0x26   : > { %s1534_s15 = smov 64   ;;  %s1535_s16 = smov 4  }
  0x27   : > { %1297 = dma.hbm_to_vmem [thread:$0]  (!%p1621_p11), %s1871_s1, 256, %s1614_s28, [#allocation6], %s1534_s15, %s1534_s15, %s1535_s16  }
  0x28   : > { %s1402_s7 = scalar_lea.hbm %s1873_s3, 256 }
  0x29   : > { %p1403_p2 = scmp.ne.s32.totalorder %s1873_s3, %s1402_s7  ;;  %p1409_p10 = scmp.lt.u32.totalorder %s1402_s7, %s1873_s3 }
  0x2b   : > { %p1405_p1 = pnand %p1403_p2, %p1376_p13 }
  0x2d   : > { %p1406_p6 = pneg %p1405_p1 }
  0x2f   : > { %p1411_p3 = pnand %p1409_p10, %p1406_p6 }
  0x31   : > { %1414 = shalt.err (!%p1411_p3)
}
  0x32   : > { %s1415_s28 = scalar_lea.vmem %s1625_s6, 256  ;;  %p1423_p12 = scmp.lt.s32.totalorder %s1625_s6, %s1625_s6 }
  0x33   : > { %p1416_p5 = scmp.ne.s32.totalorder %s1625_s6, %s1415_s28  ;;  %p1424_p0 = scmp.lt.s32.totalorder %s1415_s28, %s1415_s28 }
  0x35   : > { %p1418_p7 = pnand %p1416_p5, %p1376_p13  ;;  %p1425_p2 = por %p1424_p0, %p1423_p12 }
  0x37   : > { %p1419_p9 = pneg %p1418_p7 }
  0x39   : > { %p1426_p1 = pnand %p1425_p2, %p1419_p9 }
  0x3b   : > { %1429 = shalt.err (!%p1426_p1)
}
  0x3c   : > { %1300 = dma.hbm_to_vmem [thread:$0]  (!%p1621_p11), %s1873_s3, 256, %s1625_s6, [#allocation6], %s1534_s15, %s1534_s15, %s1535_s16  }
  0x3d   : > { %s1680_s14 = sadd.s32 1, %s1530_s21   ;;  %s29_s29 = sadd.s32 1, %s1526_s20 }
  0x3e   : > { %s26_s17 = ssub.s32 %s1530_s21, %s1680_s14  ;;  %p36_p13 = scmp.ne.s32.totalorder %s1526_s20, %s1522_s19 }
  0x3f   : > { %p27_p6 = scmp.eq.s32.totalorder %s26_s17, 0  ;;  %p37_p10 = scmp.eq.s32.totalorder %s1530_s21, 0 }
  0x40   : > { %p1883_p3 = scmp.eq.s32.totalorder %s1591_s22, 1  ;;  %p1311_p7 = scmp.lt.s32.totalorder %s1530_s21, 2 }
  0x41   : > { %s1696_s27 = scalar_select %p27_p6, %s1526_s20, %s29_s29  }
  0x42   : > { %p1690_p5 = por %p1883_p3, %p36_p13  ;;  %p38_p9 = por %p37_p10, %p36_p13 }
  0x43   : > { %s208_s30 = sand.u32 1, %s1526_s20   ;;  %s1156_s6 = sshll.u32 %s1530_s21, 7 }
  0x44   : > { %s1884_s23 = scalar_select %p1690_p5, 1, 0 }
  0x45   : > { %s1155_s7 = sshll.u32 %s208_s30, 3  ;;  %s1703_s8 = scalar_lea.hbm %s1870_s0, %s1156_s6 }
  0x46   : > { %s212_s9 = scalar_lea.vmem [#allocation2], %s1155_s7  ;;  %p1707_p11 = pnand %p1311_p7, %p38_p9 }
  0x47   : > { %s219_s10 = sshll.u32 %s212_s9, 4  ;;  %s209_s28 = scalar_lea.sflag [#allocation3], %s208_s30  ;;  %s1705_s10 = int_to_ptr.vmem [resolvable:$true] %s219_s10 }
  0x48   : > { %s1430_s12 = scalar_lea.hbm %s1703_s8, 128  ;;  %p1432_p0 = pneg %p1707_p11 }
  0x49   : > { %p1431_p12 = scmp.ne.s32.totalorder %s1703_s8, %s1430_s12  ;;  %s1435_s17 = scalar_lea.hbm %s1870_s0, 256 }
  0x4a   : > { %p1436_p13 = scmp.lt.u32.totalorder %s1703_s8, %s1870_s0  ;;  %p1437_p6 = scmp.lt.u32.totalorder %s1435_s17, %s1430_s12 }
  0x4b   : > { %p1433_p2 = pnand %p1432_p0, %p1431_p12  ;;  %p1439_p3 = scmp.lt.u32.totalorder %s1430_s12, %s1703_s8 }
  0x4c   : > { %p1438_p10 = por %p1437_p6, %p1436_p13 }
  0x4d   : > { %p1434_p1 = pneg %p1433_p2 }
  0x4e   : > { %p1440_p7 = por %p1439_p3, %p1438_p10 }
  0x50   : > { %p1441_p9 = pnand %p1440_p7, %p1434_p1 }
  0x52   : > { %1444 = shalt.err (!%p1441_p9)
}
  0x53   : > { %s1445_s30 = scalar_lea.vmem %s1705_s10, 128  ;;  %s1536_s15 = smov [#allocation2]  }
  0x54   : > { %p1446_p12 = scmp.ne.s32.totalorder %s1705_s10, %s1445_s30  ;;  %s1450_s16 = sshll.u32 %s1536_s15, 4  ;;  %s1451_s16 = int_to_ptr.vmem [resolvable:$false] %s1450_s16 }
  0x55   : > { %s1452_s9 = scalar_lea.vmem %s1451_s16, 256  ;;  %p1453_p4 = scmp.lt.s32.totalorder %s1705_s10, %s1451_s16 }
  0x56   : > { %p1448_p2 = pnand %p1446_p12, %p1432_p0  ;;  %p1454_p13 = scmp.lt.s32.totalorder %s1452_s9, %s1445_s30 }
  0x58   : > { %p1449_p5 = pneg %p1448_p2  ;;  %p1455_p6 = por %p1454_p13, %p1453_p4 }
  0x5a   : > { %p1456_p10 = pnand %p1455_p6, %p1449_p5 }
  0x5c   : > { %1459 = shalt.err (!%p1456_p10)
}
  0x5d   : > { %1304 = dma.hbm_to_vmem [thread:$0]  (!%p1707_p11), %s1703_s8, 128, %s1705_s10, %s209_s28  }
  0x5e   : > { %228 = sbr.rel (%p1610_p8) target bundleno = 1735 (0x6c7), region = 40  ;;  %s1739_s12 = sand.u32 (!%p1610_p8), 1, %s1522_s19  }
  0x5f   : > { %s1158_s13 = sshll.u32 (!%p1610_p8), %s1739_s12, 3  ;;  %s231_s29 = scalar_lea.sflag (!%p1610_p8), [#allocation3], %s1739_s12 }
  0x60   : > { %s234_s17 = scalar_lea.vmem (!%p1610_p8), [#allocation2], %s1158_s13  ;;  %p1886_p4 = scmp.ne.s32.totalorder (!%p1610_p8), %s1879_s24, 0 }
  0x65   : > { %1505 = dma.done.wait (%p1886_p4), %s231_s29, 128  }
  0x66   : > { %1507 = vsyncadd (%p1886_p4), %s231_s29, 4294967168  ;;  %p1887_p5 = scmp.eq.s32.totalorder %s1591_s22, 0 }
  0x68   : > { %1509 = dma.done.wait (%p1887_p5), [#allocation6], 512   ;;  %p1888_p8 = pmov %p1887_p5 }
  0x69   : > { %v1537_v0 = vmov 0.0   ;;  %vm1538_vm0 = vmmov 0   ;;  %v1354_v1 = vld [vmem:[#allocation5] sm:$0xff]   ;;  %v1355_v2 = vld [vmem:[#allocation5 + $0x8] sm:$0xff]   ;;  %v270_v3 = vld [vmem:[%s234_s17] sm:$0xff]  ;;  %vm295_vm1 = vcmask 261120  }
  0x6a   : > { %1511 = vsyncadd (%p1888_p8), [#allocation6], 4294966784  ;;  %1218 = vmatprep.subr.bf16.mxu0 %v1537_v0  ;;  %1222 = vmatprep.mubr.msk.bf16.mxu0 %vm1538_vm0, %v1537_v0  ;;  %v271_v4 = vpack.c.bf16 %v270_v3, %v270_v3  ;;  %v1162_v5 = vld [vmem:[%s1872_s2] ss:$0 sm:$0xff]  ;;  %vm458_vm2 = vcmask 1043456   ;;  %vm454_vm3 = vcmask 64512  }
  0x6b   : > { %1226 = vmatprep.subr.bf16.mxu1 %v1537_v0  ;;  %1228 = vmatprep.mubr.msk.bf16.mxu1 %vm1538_vm0, %v1537_v0  ;;  %s1193_s11 = sshll.u32 %s1591_s22, 7  ;;  %s268_s28 = scalar_lea.vmem [#allocation8], %s1158_s13 }
  0x6c   : > { %1219 = vmatpush3.bf16.msra.mxu0 %v1354_v1  ;;  %s1061_s7 = sshll.u32 %s268_s28, 4  ;;  %s1825_s15 = scalar_lea.hbm %s1875_s5, %s1193_s11  ;;  %s1827_s7 = int_to_ptr.vmem [resolvable:$true] %s1061_s7 }
  0x6d   : > { %1220 = vmatprep.subr.bf16.mxu0 %v1537_v0  ;;  %s1048_s22 = scalar_lea.sflag [#allocation4], %s1739_s12  ;;  %s1460_s16 = scalar_lea.vmem %s1827_s7, 128 }
  0x6e   : > { %p1461_p11 = scmp.ne.s32.totalorder %s1827_s7, %s1460_s16  ;;  %p1889_p0 = scmp.ne.s32.totalorder %s1884_s23, 0 }
  0x6f   : > { %s1539_s9 = smov [#allocation8]  }
  0x70   : > { %1221 = vmatpush3.bf16.msra.mxu0 %v1355_v2  ;;  %p1462_p1 = pnand %p1461_p11, %p1889_p0  ;;  %s1464_s13 = sshll.u32 %s1539_s9, 4  ;;  %s1465_s13 = int_to_ptr.vmem [resolvable:$false] %s1464_s13 }
  0x71   : > { %1238 = vmatprep.subr.bf16.mxu0 %v1537_v0  ;;  %s1466_s29 = scalar_lea.vmem %s1465_s13, 256  ;;  %p1467_p7 = scmp.lt.s32.totalorder %s1827_s7, %s1465_s13 }
  0x72   : > { %p1463_p3 = pneg %p1462_p1  ;;  %p1468_p9 = scmp.lt.s32.totalorder %s1466_s29, %s1460_s16 }
  0x73   : > { %1223 = vmatmul.mubr.msk.bf16.vlgmr.msra.gmra.mrb[0].mxu0 %vm295_vm1, %v271_v4 }
  0x74   : > { %1240 = vmatprep.mubr.msk.bf16.mxu0 %vm1538_vm0, %v1537_v0  ;;  %p1469_p12 = por %p1468_p9, %p1467_p7 }
  0x76   : > { %p1470_p2 = pnand %p1469_p12, %p1463_p3 }
 0x146   : > { %v333_v6 = vpop.f32.mrb[0].mxu0 }
 0x147   : > { %v1224_v7 = vpop.f32.mrb[1].mxu0  ;;  %v334_v8 = vadd.f32 %v1162_v5, %v333_v6 }
 0x148   : > { %v336_v9 = vpop.f32.mrb[2].mxu0 }
 0x149   : > { %v1225_v10 = vpop.f32.mrb[3].mxu0  ;;  %v339_v11 = vpack.c.bf16 %v334_v8, %v334_v8 }
 0x14b   : > { %340 = vxpose.xlu0.c.b16.start.end [1/1] (short) (narrow) %v339_v11, 96 }
 0x1b1   : > { %v348_v12 = vpop.trf.xlu0 }
 0x1b2   : > { %v1167_v13 = vcombine.high %v348_v12, %v348_v12  ;;  %v1166_v14 = vcombine.low %v348_v12, %v348_v12 }
 0x1b4   : > { %386 = vxpose.xlu1.c.b16.start.end [1/1] (short) (narrow) %v1167_v13, 16  ;;  %370 = vxpose.xlu0.c.b16.start.end [1/1] (short) (narrow) %v1166_v14, 16 }
 0x1b5   : > { %v349_v15 = vpop.trf.xlu0 }
 0x1b6   : > { %v1168_v16 = vcombine.low %v349_v15, %v349_v15  ;;  %v1169_v17 = vcombine.high %v349_v15, %v349_v15 }
 0x1b8   : > { %402 = vxpose.xlu1.c.b16.start.end [1/1] (short) (narrow) %v1168_v16, 16 }
 0x1b9   : > { %v350_v18 = vpop.trf.xlu0 }
 0x1ba   : > { %v1170_v19 = vcombine.low %v350_v18, %v350_v18  ;;  %v1171_v20 = vcombine.high %v350_v18, %v350_v18 }
 0x1bc   : > { %418 = vxpose.xlu1.c.b16.start.end [1/1] (short) (narrow) %v1169_v17, 16  ;;  %v460_v21 = vsel %vm458_vm2, %v1170_v19, 0  ;;  %v506_v22 = vsel %vm458_vm2, %v1171_v20, 0 }
 0x1bd   : > { %1227 = vmatpush3.bf16.msra.mxu1 %v460_v21  ;;  %v351_v23 = vpop.trf.xlu0 }
 0x1be   : > { %v1172_v24 = vcombine.low %v351_v23, %v351_v23  ;;  %v1173_v25 = vcombine.high %v351_v23, %v351_v23  ;;  %1232 = vmatprep.subr.bf16.mxu1 %v1537_v0 }
 0x1c0   : > { %v552_v26 = vsel %vm458_vm2, %v1172_v24, 0  ;;  %v598_v27 = vsel %vm458_vm2, %v1173_v25, 0 }
 0x1c1   : > { %1239 = vmatpush3.bf16.msra.mxu0 %v552_v26  ;;  %v352_v28 = vpop.trf.xlu0 }
 0x1c2   : > { %1250 = vmatprep.subr.bf16.mxu0 %v1537_v0  ;;  %v1174_v32 = vcombine.low %v352_v28, %v352_v28  ;;  %v1175_v35 = vcombine.high %v352_v28, %v352_v28 }
 0x1c4   : > { %v704_v34 = vsel %vm454_vm3, %v1174_v32, 0  ;;  %v750_v37 = vsel %vm454_vm3, %v1175_v35, 0 }
 0x1c5   : > { %v1769_v29 = vpop.trf.xlu0 }
 0x1c6   : > { %v1176_v25 = vcombine.low %v1769_v29, %v1769_v29 }
 0x21a   : > { %v394_v30 = vpop.trf.xlu1  ;;  %v378_v31 = vpop.trf.xlu0 }
 0x21b   : > { %1229 = vmatmul.mubr.msk.bf16.vlgmr.msra.gmra.mrb[0].mxu1 %vm454_vm3, %v378_v31 }
 0x21c   : > { %1233 = vmatpush3.bf16.msra.mxu1 %v506_v22  ;;  %1234 = vmatprep.mubr.msk.bf16.mxu1 %vm1538_vm0, %v1537_v0 }
 0x21d   : > { %1244 = vmatprep.subr.bf16.mxu1 %v1537_v0 }
 0x21e   : > { %v410_v33 = vpop.trf.xlu1 }
 0x21f   : > { %1241 = vmatmul.mubr.msk.bf16.vlgmr.msra.gmra.mrb[4].mxu0 %vm454_vm3, %v410_v33 }
 0x220   : > { %1251 = vmatpush3.bf16.xpose.msra.mxu0 %v704_v34  ;;  %1252 = vmatprep.mubr.msk.bf16.mxu0 %vm1538_vm0, %v1537_v0  ;;  %v796_v34 = vsel %vm454_vm3, %v1176_v25, 0 }
 0x221   : > { %1262 = vmatprep.subr.bf16.mxu0 %v1537_v0 }
 0x222   : > { %v426_v36 = vpop.trf.xlu1 }
 0x223   : > { %1235 = vmatmul.mubr.msk.bf16.vlgmr.msra.gmra.mrb[4].mxu1 %vm454_vm3, %v394_v30 }
 0x224   : > { %1245 = vmatpush3.bf16.msra.mxu1 %v598_v27  ;;  %1246 = vmatprep.mubr.msk.bf16.mxu1 %vm1538_vm0, %v1537_v0 }
 0x225   : > { %1256 = vmatprep.subr.bf16.mxu1 %v1537_v0 }
 0x22b   : > { %1247 = vmatmul.mubr.msk.bf16.vlgmr.msra.gmra.mrb[8].mxu1 %vm454_vm3, %v426_v36 }
 0x22c   : > { %1258 = vmatprep.mubr.msk.bf16.mxu1 %vm1538_vm0, %v1537_v0 }
 0x22d   : > { %1257 = vmatpush3.bf16.xpose.msra.mxu1 %v750_v37  ;;  %v1177_v37 = vcombine.high %v1769_v29, %v1769_v29 }
 0x22e   : > { %1268 = vmatprep.subr.bf16.mxu1 %v1537_v0 }
 0x2ee   : > { %v496_v38 = vpop.f32.mrb[0].mxu1 }
 0x2ef   : > { %v1230_v39 = vpop.f32.mrb[1].mxu1  ;;  %v640_v40 = vsel %vm454_vm3, %v496_v38, -inf }
 0x2f0   : > { %641 = vmax.xlane.f32.xlu1 %v640_v40  ;;  %v499_v41 = vpop.f32.mrb[2].mxu1 }
 0x2f1   : > { %v1231_v42 = vpop.f32.mrb[3].mxu1 }
 0x2f2   : > { %v588_v43 = vpop.f32.mrb[4].mxu0 }
 0x2f3   : > { %v646_v44 = vsel %vm454_vm3, %v588_v43, -inf  ;;  %v1242_v45 = vpop.f32.mrb[5].mxu0 }
 0x2f4   : > { %647 = vmax.xlane.f32.xlu1 %v646_v44  ;;  %v591_v46 = vpop.f32.mrb[6].mxu0  ;;  %v842_v44 = vsel %vm454_vm3, %v1177_v37, 0 }
 0x2f5   : > { %v1243_v47 = vpop.f32.mrb[7].mxu0 }
 0x2f6   : > { %v542_v48 = vpop.f32.mrb[4].mxu1  ;;  %v1356_v47 = vld [vmem:[#allocation7] sm:$0xff]  }
 0x2f7   : > { %v1236_v49 = vpop.f32.mrb[5].mxu1  ;;  %v643_v50 = vsel %vm454_vm3, %v542_v48, -inf }
 0x2f8   : > { %644 = vmax.xlane.f32.xlu0 %v643_v50  ;;  %v545_v51 = vpop.f32.mrb[6].mxu1 }
 0x2f9   : > { %v1237_v52 = vpop.f32.mrb[7].mxu1 }
 0x2fe   : > { %v634_v53 = vpop.f32.mrb[8].mxu1 }
 0x2ff   : > { %v1248_v54 = vpop.f32.mrb[9].mxu1  ;;  %v649_v55 = vsel %vm454_vm3, %v634_v53, -inf }
 0x300   : > { %v637_v56 = vpop.f32.mrb[10].mxu1  ;;  %650 = vmax.xlane.f32.xlu1 %v649_v55 }
 0x301   : > { %v1249_v57 = vpop.f32.mrb[11].mxu1 }
 0x37d   : > { %v642_v58 = vpop.xlane.xlu1 %641 }
 0x37e   : > { %v652_v59 = vsub.f32 %v496_v38, %v642_v58 }
 0x380   : > { %v656_v60 = vmul.f32 1.442695, %v652_v59 }
 0x381   : > { %v648_v61 = vpop.xlane.xlu1 %647 }
 0x382   : > { %1358 = vpow2.f32 %v656_v60  ;;  %v654_v62 = vsub.f32 %v588_v43, %v648_v61 }
 0x384   : > { %v660_v63 = vmul.f32 1.442695, %v654_v62 }
 0x385   : > { %v645_v1 = vpop.xlane.xlu0 %644 }
 0x386   : > { %1360 = vpow2.f32 %v660_v63  ;;  %v653_v2 = vsub.f32 %v542_v48, %v645_v1  ;;  %v1357_v48 = vld [vmem:[#allocation7 + $0x8] sm:$0xff]  }
 0x388   : > { %v658_v3 = vmul.f32 1.442695, %v653_v2 }
 0x38a   : > { %1362 = vpow2.f32 %v658_v3 }
 0x38c   : > { %v1359_v4 = vpop.eup %1358 }
 0x38d   : > { %v651_v5 = vpop.xlane.xlu1 %650  ;;  %v664_v6 = vsel %vm454_vm3, %v1359_v4, 0.0 }
 0x38e   : > { %v655_v7 = vsub.f32 %v634_v53, %v651_v5  ;;  %665 = vadd.xlane.f32.xlu1 %v664_v6 }
 0x390   : > { %v1361_v8 = vpop.eup %1360  ;;  %v662_v9 = vmul.f32 1.442695, %v655_v7 }
 0x391   : > { %v670_v10 = vsel %vm454_vm3, %v1361_v8, 0.0 }
 0x392   : > { %1364 = vpow2.f32 %v662_v9  ;;  %671 = vadd.xlane.f32.xlu0 %v670_v10 }
 0x394   : > { %v1363_v11 = vpop.eup %1362 }
 0x395   : > { %v667_v12 = vsel %vm454_vm3, %v1363_v11, 0.0 }
 0x396   : > { %668 = vadd.xlane.f32.xlu1 %v667_v12  ;;  %v1188_v12 = vld [vmem:[%s1874_s4] ss:$0 sm:$0xff] }
 0x39c   : > { %v1365_v13 = vpop.eup %1364 }
 0x39d   : > { %v673_v14 = vsel %vm454_vm3, %v1365_v13, 0.0 }
 0x39e   : > { %674 = vadd.xlane.f32.xlu1 %v673_v14 }
 0x41b   : > { %v666_v15 = vpop.xlane.xlu1 %665 }
 0x41c   : > { %1366 = vrcp.f32 %v666_v15 }
 0x41f   : > { %v672_v16 = vpop.xlane.xlu0 %671 }
 0x420   : > { %1368 = vrcp.f32 %v672_v16 }
 0x423   : > { %v669_v17 = vpop.xlane.xlu1 %668 }
 0x424   : > { %1370 = vrcp.f32 %v669_v17 }
 0x426   : > { %v1367_v18 = vpop.eup %1366 }
 0x427   : > { %v680_v19 = vmul.f32 %v1367_v18, %v666_v15 }
 0x429   : > { %v684_v20 = vsub.f32 2.0, %v680_v19 }
 0x42a   : > { %v1369_v21 = vpop.eup %1368 }
 0x42b   : > { %v688_v22 = vmul.f32 %v1367_v18, %v684_v20  ;;  %v682_v23 = vmul.f32 %v1369_v21, %v672_v16  ;;  %v675_v24 = vpop.xlane.xlu1 %674 }
 0x42c   : > { %1372 = vrcp.f32 %v675_v24 }
 0x42d   : > { %v692_v26 = vmul.f32 %v1359_v4, %v688_v22  ;;  %v686_v27 = vsub.f32 2.0, %v682_v23 }
 0x42e   : > { %v1371_v28 = vpop.eup %1370 }
 0x42f   : > { %v696_v30 = vpack.c.bf16 %v692_v26, %v692_v26  ;;  %v690_v31 = vmul.f32 %v1369_v21, %v686_v27  ;;  %v681_v32 = vmul.f32 %v1371_v28, %v669_v17 }
 0x431   : > { %v685_v33 = vsub.f32 2.0, %v681_v32  ;;  %1253 = vmatmul.mubr.msk.bf16.vlgmr.msra.gmra.mrb[8].mxu0 %vm454_vm3, %v696_v30  ;;  %v694_v35 = vmul.f32 %v1361_v8, %v690_v31 }
 0x432   : > { %1263 = vmatpush3.bf16.xpose.msra.mxu0 %v796_v34  ;;  %1264 = vmatprep.mubr.msk.bf16.mxu0 %vm1538_vm0, %v1537_v0 }
 0x433   : > { %v689_v36 = vmul.f32 %v1371_v28, %v685_v33  ;;  %1274 = vmatprep.subr.bf16.mxu0 %v1537_v0  ;;  %v698_v40 = vpack.c.bf16 %v694_v35, %v694_v35 }
 0x435   : > { %v693_v38 = vmul.f32 %v1363_v11, %v689_v36 }
 0x436   : > { %v1373_v39 = vpop.eup %1372 }
 0x437   : > { %v697_v41 = vpack.c.bf16 %v693_v38, %v693_v38  ;;  %v683_v42 = vmul.f32 %v1373_v39, %v675_v24 }
 0x439   : > { %v687_v43 = vsub.f32 2.0, %v683_v42  ;;  %1259 = vmatmul.mubr.msk.bf16.vlgmr.msra.gmra.mrb[12].mxu1 %vm454_vm3, %v697_v41  ;;  %1265 = vmatmul.mubr.msk.bf16.vlgmr.msra.gmra.mrb[12].mxu0 %vm454_vm3, %v698_v40 }
 0x43a   : > { %1269 = vmatpush3.bf16.xpose.msra.mxu1 %v842_v44  ;;  %1270 = vmatprep.mubr.msk.bf16.mxu1 %vm1538_vm0, %v1537_v0 }
 0x43b   : > { %v691_v45 = vmul.f32 %v1373_v39, %v687_v43  ;;  %1278 = vmatprep.mubr.msk.bf16.mxu0 %vm1538_vm0, %v1537_v0  ;;  %1275 = vmatpush3.bf16.msra.mxu0 %v1356_v47 }
 0x43c   : > { %1276 = vmatprep.subr.bf16.mxu0 %v1537_v0 }
 0x43d   : > { %v695_v29 = vmul.f32 %v1365_v13, %v691_v45 }
 0x43f   : > { %v699_v46 = vpack.c.bf16 %v695_v29, %v695_v29  ;;  %1277 = vmatpush3.bf16.msra.mxu0 %v1357_v48 }
 0x441   : > { %1271 = vmatmul.mubr.msk.bf16.vlgmr.msra.gmra.mrb[16].mxu1 %vm454_vm3, %v699_v46 }
 0x504   : > { %v740_v49 = vpop.f32.mrb[8].mxu0 }
 0x505   : > { %v884_v50 = vpack.c.bf16 %v740_v49, %v740_v49  ;;  %v1254_v51 = vpop.f32.mrb[9].mxu0 }
 0x506   : > { %v743_v52 = vpop.f32.mrb[10].mxu0 }
 0x507   : > { %888 = vxpose.xlu0.c.b16.start.end [1/1] (short) (narrow) %v884_v50, 16  ;;  %v1255_v53 = vpop.f32.mrb[11].mxu0 }
 0x50c   : > { %v786_v54 = vpop.f32.mrb[12].mxu1  ;;  %v832_v55 = vpop.f32.mrb[12].mxu0 }
 0x50d   : > { %v885_v56 = vpack.c.bf16 %v786_v54, %v786_v54  ;;  %v886_v57 = vpack.c.bf16 %v832_v55, %v832_v55  ;;  %v1260_v58 = vpop.f32.mrb[13].mxu1  ;;  %v1266_v59 = vpop.f32.mrb[13].mxu0 }
 0x50e   : > { %v789_v60 = vpop.f32.mrb[14].mxu1  ;;  %v835_v61 = vpop.f32.mrb[14].mxu0 }
 0x50f   : > { %904 = vxpose.xlu1.c.b16.start.end [1/1] (short) (narrow) %v885_v56, 16  ;;  %v1261_v62 = vpop.f32.mrb[15].mxu1  ;;  %920 = vxpose.xlu0.c.b16.start.end [1/1] (short) (narrow) %v886_v57, 16  ;;  %v1267_v63 = vpop.f32.mrb[15].mxu0 }
 0x514   : > { %v878_v0 = vpop.f32.mrb[16].mxu1 }
 0x515   : > { %v887_v1 = vpack.c.bf16 %v878_v0, %v878_v0  ;;  %v1272_v2 = vpop.f32.mrb[17].mxu1 }
 0x516   : > { %v881_v3 = vpop.f32.mrb[18].mxu1 }
 0x517   : > { %936 = vxpose.xlu1.c.b16.start.end [1/1] (short) (narrow) %v887_v1, 16  ;;  %v1273_v4 = vpop.f32.mrb[19].mxu1 }
 0x56d   : > { %v896_v5 = vpop.trf.xlu0 }
 0x575   : > { %v912_v6 = vpop.trf.xlu1  ;;  %v928_v8 = vpop.trf.xlu0 }
 0x576   : > { %v1186_v7 = vcombine.low %v896_v5, %v912_v6 }
 0x578   : > { %964 = vxpose.xlu0.c.b16.start [1/2] (short) (narrow) %v1186_v7, 16 }
 0x57d   : > { %v944_v9 = vpop.trf.xlu1 }
 0x57e   : > { %v1187_v10 = vcombine.low %v928_v8, %v944_v9 }
 0x580   : > { %965 = vxpose.xlu0.c.b16.end [2/2] (short) (narrow) %v1187_v10, 16 }
 0x5e2   : > { %v972_v11 = vpop.trf.xlu0 }
 0x5e3   : > { %1279 = vmatmul.mubr.msk.bf16.vlgmr.msra.gmra.mrb[16].mxu0 %vm295_vm1, %v972_v11 }
 0x6b6   : > { %v1040_v13 = vpop.f32.mrb[16].mxu0 }
 0x6b7   : > { %v1041_v14 = vadd.f32 %v1188_v12, %v1040_v13  ;;  %v1280_v15 = vpop.f32.mrb[17].mxu0 }
 0x6b8   : > { %v1043_v16 = vpop.f32.mrb[18].mxu0 }
 0x6b9   : > { %v1281_v17 = vpop.f32.mrb[19].mxu0  ;;  %1046 = vst.msk [vmem:[%s268_s28] sm:$0xff] %vm295_vm1, %v1041_v14 }
 0x6ba   : > { %1473 = shalt.err (!%p1470_p2)
}
 0x6bb   : > { %s1474_s12 = scalar_lea.hbm %s1825_s15, 128  ;;  %s1478_s26 = scalar_lea.hbm %s1875_s5, 256 }
 0x6bc   : > { %p1475_p13 = scmp.ne.s32.totalorder %s1825_s15, %s1474_s12  ;;  %p1479_p4 = scmp.lt.u32.totalorder %s1825_s15, %s1875_s5 }
 0x6bd   : > { %p1480_p5 = scmp.lt.u32.totalorder %s1478_s26, %s1474_s12  ;;  %p1482_p11 = scmp.lt.u32.totalorder %s1474_s12, %s1825_s15 }
 0x6be   : > { %p1476_p6 = pnand %p1475_p13, %p1889_p0 }
 0x6bf   : > { %p1481_p8 = por %p1480_p5, %p1479_p4 }
 0x6c0   : > { %p1477_p10 = pneg %p1476_p6 }
 0x6c1   : > { %p1483_p1 = por %p1482_p11, %p1481_p8 }
 0x6c3   : > { %p1484_p3 = pnand %p1483_p1, %p1477_p10 }
 0x6c5   : > { %1487 = shalt.err (!%p1484_p3)
}
 0x6c6   : > { %1292 = dma.vmem_to_hbm [thread:$0]  (%p1889_p0), %s1827_s7, 128, %s1825_s15, %s1048_s22  }
 0x6c7 PF: > { %s1073_s11 = sand.u32 1, %s1518_s18   ;;  %p1890_p7 = scmp.ne.s32.totalorder %s1880_s25, 0 }
 0x6c8   : > { %p1891_p9 = scmp.ge.s32.totalorder %s1530_s21, 2  ;;  %s1074_s28 = scalar_lea.sflag [#allocation4], %s1073_s11 }
 0x6ca   : > { %p1306_p12 = pnand %p1891_p9, %p1890_p7 }
 0x6cc   : > { %1513 = dma.done.wait (!%p1306_p12), %s1074_s28, 128  }
 0x6cd   : > { %1515 = vsyncadd (!%p1306_p12), %s1074_s28, 4294967168  ;;  %p19_p2 = scmp.ge.s32.totalorder %s1680_s14, 4   ;;  %s1892_s18 = smov %s1522_s19 }
 0x6ce   : > { %s1893_s19 = smov %s1526_s20  ;;  %s1894_s20 = smov %s1696_s27 }
 0x6cf   : > { %s1895_s21 = smov %s1680_s14  ;;  %21 = sbr.rel (!%p19_p2) target bundleno = 6 (0x6), region = 93 }
 0x6d6   :  { %1079 = vsyncpa [#allocation3], 1 }
 0x6d7   :  { %1081 = vsyncpa [#allocation3 + $0x1], 1 }
 0x6d8   :  { %1082 = vsyncpa [#allocation6], 1 }
 0x6d9   :  { %1083 = vsyncpa [#allocation4], 1 }
 0x6da   :  { %1085 = vsyncpa [#allocation4 + $0x1], 1 }

// kernel: tpu_custom_call.1
= control target key start
LH: loop header
LB: loop body
LE: loop exit
PB: predicated region body
PF: predicated region fallthrough
CT: control target
= control target key end

     0   :  { %10 = vsyncpa [#allocation3], 0  ;;  %s1870_s0 = inlined_call_operand.hbm [shape: f32[2,8,32], index: 0, kind: input, shape index: {}]   ;;  %s1871_s1 = inlined_call_operand.hbm [shape: bf16[32,96], index: 1, kind: input, shape index: {}]   ;;  %s1872_s2 = inlined_call_operand.vmem [shape: f32[1,96], index: 2, kind: input, shape index: {}]   ;;  %s1873_s3 = inlined_call_operand.hbm [shape: bf16[32,32], index: 3, kind: input, shape index: {}]   ;;  %s1874_s4 = inlined_call_operand.vmem [shape: f32[1,32], index: 4, kind: input, shape index: {}]   ;;  %s1875_s5 = inlined_call_operand.hbm [shape: f32[2,8,32], index: 5, kind: output, shape index: {}]  }
   0x1   :  { %12 = vsyncpa [#allocation3 + $0x1], 0 }
   0x2   :  { %13 = vsyncpa [#allocation6], 0 }
   0x3   :  { %14 = vsyncpa [#allocation4], 0 }
   0x4   :  { %16 = vsyncpa [#allocation4 + $0x1], 0  ;;  %s1570_s18 = smov 0   ;;  %s1572_s19 = smov 0  }
   0x5   :  { %s1574_s20 = smov 0   ;;  %s1576_s21 = smov 0  }
   0x6 LB: > { %s1591_s22 = sadd.s32 4294967295, %s1530_s21   ;;  %s1150_s23 = sadd.s32 4294967294, %s1530_s21   ;;  %s1530_s21 = sphi %s1576_s21, %s1895_s21   ;;  %s1526_s20 = sphi %s1574_s20, %s1894_s20   ;;  %s1522_s19 = sphi %s1572_s19, %s1893_s19   ;;  %s1518_s18 = sphi %s1570_s18, %s1892_s18  }
   0x7   : > { %p42_p0 = scmp.ne.s32.totalorder %s1522_s19, %s1518_s18  ;;  %p1876_p1 = scmp.eq.s32.totalorder %s1591_s22, 0 }
   0x8   : > { %p156_p3 = scmp.eq.s32.totalorder %s1150_s23, 1  ;;  %p1151_p5 = scmp.ge.s32.totalorder %s1530_s21, 1 }
   0x9   : > { %p1600_p4 = por %p1876_p1, %p42_p0  ;;  %p163_p7 = scmp.lt.s32.totalorder %s1530_s21, 3 }
   0xa   : > { %p1605_p6 = por %p156_p3, %p42_p0  ;;  %s1532_s27 = smov [#allocation5]  }
   0xb   : > { %s1879_s24 = scalar_select %p1600_p4, 1, 0 }
   0xc   : > { %s1880_s25 = scalar_select %p1605_p6, 1, 0 }
   0xd   : > { %p1610_p8 = pnand %p1151_p5, %p163_p7  ;;  %s175_s28 = sshll.u32 %s1532_s27, 4  ;;  %s1614_s28 = int_to_ptr.vmem [resolvable:$true] %s175_s28 }
   0xe   : > { %s1533_s30 = smov [#allocation7]   ;;  %s1374_s9 = scalar_lea.hbm %s1871_s1, 256 }
   0xf   : > { %p1294_p9 = pneg %p1610_p8  ;;  %s191_s6 = sshll.u32 %s1533_s30, 4  ;;  %s1625_s6 = int_to_ptr.vmem [resolvable:$true] %s191_s6 }
  0x10   : > { %p1375_p12 = scmp.ne.s32.totalorder %s1871_s1, %s1374_s9  ;;  %p1381_p5 = scmp.lt.u32.totalorder %s1374_s9, %s1871_s1 }
  0x11   : > { %p1621_p11 = pnand %p1294_p9, %p1876_p1 }
  0x13   : > { %p1376_p13 = pneg %p1621_p11 }
  0x15   : > { %p1377_p0 = pnand %p1376_p13, %p1375_p12 }
  0x17   : > { %p1378_p3 = pneg %p1377_p0 }
  0x19   : > { %p1383_p7 = pnand %p1381_p5, %p1378_p3 }
  0x1b   : > { %1386 = shalt.err (!%p1383_p7)
}
  0x1c   : > { %s1387_s14 = scalar_lea.vmem %s1614_s28, 256  ;;  %p1395_p2 = scmp.lt.s32.totalorder %s1614_s28, %s1614_s28 }
  0x1d   : > { %p1388_p9 = scmp.ne.s32.totalorder %s1614_s28, %s1387_s14  ;;  %p1396_p12 = scmp.lt.s32.totalorder %s1387_s14, %s1387_s14 }
  0x1f   : > { %p1390_p10 = pnand %p1388_p9, %p1376_p13  ;;  %p1397_p0 = por %p1396_p12, %p1395_p2 }
  0x21   : > { %p1391_p1 = pneg %p1390_p10 }
  0x23   : > { %p1398_p6 = pnand %p1397_p0, %p1391_p1 }
  0x25   : > { %1401 = shalt.err (!%p1398_p6)
}
  0x26   : > { %s1534_s15 = smov 64   ;;  %s1535_s16 = smov 4  }
  0x27   : > { %1297 = dma.hbm_to_vmem [thread:$0]  (!%p1621_p11), %s1871_s1, 256, %s1614_s28, [#allocation6], %s1534_s15, %s1534_s15, %s1535_s16  }
  0x28   : > { %s1402_s7 = scalar_lea.hbm %s1873_s3, 256 }
  0x29   : > { %p1403_p2 = scmp.ne.s32.totalorder %s1873_s3, %s1402_s7  ;;  %p1409_p10 = scmp.lt.u32.totalorder %s1402_s7, %s1873_s3 }
  0x2b   : > { %p1405_p1 = pnand %p1403_p2, %p1376_p13 }
  0x2d   : > { %p1406_p6 = pneg %p1405_p1 }
  0x2f   : > { %p1411_p3 = pnand %p1409_p10, %p1406_p6 }
  0x31   : > { %1414 = shalt.err (!%p1411_p3)
}
  0x32   : > { %s1415_s28 = scalar_lea.vmem %s1625_s6, 256  ;;  %p1423_p12 = scmp.lt.s32.totalorder %s1625_s6, %s1625_s6 }
  0x33   : > { %p1416_p5 = scmp.ne.s32.totalorder %s1625_s6, %s1415_s28  ;;  %p1424_p0 = scmp.lt.s32.totalorder %s1415_s28, %s1415_s28 }
  0x35   : > { %p1418_p7 = pnand %p1416_p5, %p1376_p13  ;;  %p1425_p2 = por %p1424_p0, %p1423_p12 }
  0x37   : > { %p1419_p9 = pneg %p1418_p7 }
  0x39   : > { %p1426_p1 = pnand %p1425_p2, %p1419_p9 }
  0x3b   : > { %1429 = shalt.err (!%p1426_p1)
}
  0x3c   : > { %1300 = dma.hbm_to_vmem [thread:$0]  (!%p1621_p11), %s1873_s3, 256, %s1625_s6, [#allocation6], %s1534_s15, %s1534_s15, %s1535_s16  }
  0x3d   : > { %s1680_s14 = sadd.s32 1, %s1530_s21   ;;  %s29_s29 = sadd.s32 1, %s1526_s20 }
  0x3e   : > { %s26_s17 = ssub.s32 %s1530_s21, %s1680_s14  ;;  %p36_p13 = scmp.ne.s32.totalorder %s1526_s20, %s1522_s19 }
  0x3f   : > { %p27_p6 = scmp.eq.s32.totalorder %s26_s17, 0  ;;  %p37_p10 = scmp.eq.s32.totalorder %s1530_s21, 0 }
  0x40   : > { %p1883_p3 = scmp.eq.s32.totalorder %s1591_s22, 1  ;;  %p1311_p7 = scmp.lt.s32.totalorder %s1530_s21, 2 }
  0x41   : > { %s1696_s27 = scalar_select %p27_p6, %s1526_s20, %s29_s29  }
  0x42   : > { %p1690_p5 = por %p1883_p3, %p36_p13  ;;  %p38_p9 = por %p37_p10, %p36_p13 }
  0x43   : > { %s208_s30 = sand.u32 1, %s1526_s20   ;;  %s1156_s6 = sshll.u32 %s1530_s21, 7 }
  0x44   : > { %s1884_s23 = scalar_select %p1690_p5, 1, 0 }
  0x45   : > { %s1155_s7 = sshll.u32 %s208_s30, 3  ;;  %s1703_s8 = scalar_lea.hbm %s1870_s0, %s1156_s6 }
  0x46   : > { %s212_s9 = scalar_lea.vmem [#allocation2], %s1155_s7  ;;  %p1707_p11 = pnand %p1311_p7, %p38_p9 }
  0x47   : > { %s219_s10 = sshll.u32 %s212_s9, 4  ;;  %s209_s28 = scalar_lea.sflag [#allocation3], %s208_s30  ;;  %s1705_s10 = int_to_ptr.vmem [resolvable:$true] %s219_s10 }
  0x48   : > { %s1430_s12 = scalar_lea.hbm %s1703_s8, 128  ;;  %p1432_p0 = pneg %p1707_p11 }
  0x49   : > { %p1431_p12 = scmp.ne.s32.totalorder %s1703_s8, %s1430_s12  ;;  %s1435_s17 = scalar_lea.hbm %s1870_s0, 256 }
  0x4a   : > { %p1436_p13 = scmp.lt.u32.totalorder %s1703_s8, %s1870_s0  ;;  %p1437_p6 = scmp.lt.u32.totalorder %s1435_s17, %s1430_s12 }
  0x4b   : > { %p1433_p2 = pnand %p1432_p0, %p1431_p12  ;;  %p1439_p3 = scmp.lt.u32.totalorder %s1430_s12, %s1703_s8 }
  0x4c   : > { %p1438_p10 = por %p1437_p6, %p1436_p13 }
  0x4d   : > { %p1434_p1 = pneg %p1433_p2 }
  0x4e   : > { %p1440_p7 = por %p1439_p3, %p1438_p10 }
  0x50   : > { %p1441_p9 = pnand %p1440_p7, %p1434_p1 }
  0x52   : > { %1444 = shalt.err (!%p1441_p9)
}
  0x53   : > { %s1445_s30 = scalar_lea.vmem %s1705_s10, 128  ;;  %s1536_s15 = smov [#allocation2]  }
  0x54   : > { %p1446_p12 = scmp.ne.s32.totalorder %s1705_s10, %s1445_s30  ;;  %s1450_s16 = sshll.u32 %s1536_s15, 4  ;;  %s1451_s16 = int_to_ptr.vmem [resolvable:$false] %s1450_s16 }
  0x55   : > { %s1452_s9 = scalar_lea.vmem %s1451_s16, 256  ;;  %p1453_p4 = scmp.lt.s32.totalorder %s1705_s10, %s1451_s16 }
  0x56   : > { %p1448_p2 = pnand %p1446_p12, %p1432_p0  ;;  %p1454_p13 = scmp.lt.s32.totalorder %s1452_s9, %s1445_s30 }
  0x58   : > { %p1449_p5 = pneg %p1448_p2  ;;  %p1455_p6 = por %p1454_p13, %p1453_p4 }
  0x5a   : > { %p1456_p10 = pnand %p1455_p6, %p1449_p5 }
  0x5c   : > { %1459 = shalt.err (!%p1456_p10)
}
  0x5d   : > { %1304 = dma.hbm_to_vmem [thread:$0]  (!%p1707_p11), %s1703_s8, 128, %s1705_s10, %s209_s28  }
  0x5e   : > { %228 = sbr.rel (%p1610_p8) target bundleno = 1735 (0x6c7), region = 40  ;;  %s1739_s12 = sand.u32 (!%p1610_p8), 1, %s1522_s19  }
  0x5f   : > { %s1158_s13 = sshll.u32 (!%p1610_p8), %s1739_s12, 3  ;;  %s231_s29 = scalar_lea.sflag (!%p1610_p8), [#allocation3], %s1739_s12 }
  0x60   : > { %s234_s17 = scalar_lea.vmem (!%p1610_p8), [#allocation2], %s1158_s13  ;;  %p1886_p4 = scmp.ne.s32.totalorder (!%p1610_p8), %s1879_s24, 0 }
  0x65   : > { %1505 = dma.done.wait (%p1886_p4), %s231_s29, 128  }
  0x66   : > { %1507 = vsyncadd (%p1886_p4), %s231_s29, 4294967168  ;;  %p1887_p5 = scmp.eq.s32.totalorder %s1591_s22, 0 }
  0x68   : > { %1509 = dma.done.wait (%p1887_p5), [#allocation6], 512   ;;  %p1888_p8 = pmov %p1887_p5 }
  0x69   : > { %v1537_v0 = vmov 0.0   ;;  %vm1538_vm0 = vmmov 0   ;;  %v1354_v1 = vld [vmem:[#allocation5] sm:$0xff]   ;;  %v1355_v2 = vld [vmem:[#allocation5 + $0x8] sm:$0xff]   ;;  %v270_v3 = vld [vmem:[%s234_s17] sm:$0xff]  ;;  %vm295_vm1 = vcmask 261120  }
  0x6a   : > { %1511 = vsyncadd (%p1888_p8), [#allocation6], 4294966784  ;;  %1218 = vmatprep.subr.bf16.mxu0 %v1537_v0  ;;  %1222 = vmatprep.mubr.msk.bf16.mxu0 %vm1538_vm0, %v1537_v0  ;;  %v271_v4 = vpack.c.bf16 %v270_v3, %v270_v3  ;;  %v1162_v5 = vld [vmem:[%s1872_s2] ss:$0 sm:$0xff]  ;;  %vm458_vm2 = vcmask 1043456   ;;  %vm454_vm3 = vcmask 64512  }
  0x6b   : > { %1226 = vmatprep.subr.bf16.mxu1 %v1537_v0  ;;  %1228 = vmatprep.mubr.msk.bf16.mxu1 %vm1538_vm0, %v1537_v0  ;;  %s1193_s11 = sshll.u32 %s1591_s22, 7  ;;  %s268_s28 = scalar_lea.vmem [#allocation8], %s1158_s13 }
  0x6c   : > { %1219 = vmatpush3.bf16.msra.mxu0 %v1354_v1  ;;  %s1061_s7 = sshll.u32 %s268_s28, 4  ;;  %s1825_s15 = scalar_lea.hbm %s1875_s5, %s1193_s11  ;;  %s1827_s7 = int_to_ptr.vmem [resolvable:$true] %s1061_s7 }
  0x6d   : > { %1220 = vmatprep.subr.bf16.mxu0 %v1537_v0  ;;  %s1048_s22 = scalar_lea.sflag [#allocation4], %s1739_s12  ;;  %s1460_s16 = scalar_lea.vmem %s1827_s7, 128 }
  0x6e   : > { %p1461_p11 = scmp.ne.s32.totalorder %s1827_s7, %s1460_s16  ;;  %p1889_p0 = scmp.ne.s32.totalorder %s1884_s23, 0 }
  0x6f   : > { %s1539_s9 = smov [#allocation8]  }
  0x70   : > { %1221 = vmatpush3.bf16.msra.mxu0 %v1355_v2  ;;  %p1462_p1 = pnand %p1461_p11, %p1889_p0  ;;  %s1464_s13 = sshll.u32 %s1539_s9, 4  ;;  %s1465_s13 = int_to_ptr.vmem [resolvable:$false] %s1464_s13 }
  0x71   : > { %1238 = vmatprep.subr.bf16.mxu0 %v1537_v0  ;;  %s1466_s29 = scalar_lea.vmem %s1465_s13, 256  ;;  %p1467_p7 = scmp.lt.s32.totalorder %s1827_s7, %s1465_s13 }
  0x72   : > { %p1463_p3 = pneg %p1462_p1  ;;  %p1468_p9 = scmp.lt.s32.totalorder %s1466_s29, %s1460_s16 }
  0x73   : > { %1223 = vmatmul.mubr.msk.bf16.vlgmr.msra.gmra.mrb[0].mxu0 %vm295_vm1, %v271_v4 }
  0x74   : > { %1240 = vmatprep.mubr.msk.bf16.mxu0 %vm1538_vm0, %v1537_v0  ;;  %p1469_p12 = por %p1468_p9, %p1467_p7 }
  0x76   : > { %p1470_p2 = pnand %p1469_p12, %p1463_p3 }
 0x146   : > { %v333_v6 = vpop.f32.mrb[0].mxu0 }
 0x147   : > { %v1224_v7 = vpop.f32.mrb[1].mxu0  ;;  %v334_v8 = vadd.f32 %v1162_v5, %v333_v6 }
 0x148   : > { %v336_v9 = vpop.f32.mrb[2].mxu0 }
 0x149   : > { %v1225_v10 = vpop.f32.mrb[3].mxu0  ;;  %v339_v11 = vpack.c.bf16 %v334_v8, %v334_v8 }
 0x14b   : > { %340 = vxpose.xlu0.c.b16.start.end [1/1] (short) (narrow) %v339_v11, 96 }
 0x1b1   : > { %v348_v12 = vpop.trf.xlu0 }
 0x1b2   : > { %v1167_v13 = vcombine.high %v348_v12, %v348_v12  ;;  %v1166_v14 = vcombine.low %v348_v12, %v348_v12 }
 0x1b4   : > { %386 = vxpose.xlu1.c.b16.start.end [1/1] (short) (narrow) %v1167_v13, 16  ;;  %370 = vxpose.xlu0.c.b16.start.end [1/1] (short) (narrow) %v1166_v14, 16 }
 0x1b5   : > { %v349_v15 = vpop.trf.xlu0 }
 0x1b6   : > { %v1168_v16 = vcombine.low %v349_v15, %v349_v15  ;;  %v1169_v17 = vcombine.high %v349_v15, %v349_v15 }
 0x1b8   : > { %402 = vxpose.xlu1.c.b16.start.end [1/1] (short) (narrow) %v1168_v16, 16 }
 0x1b9   : > { %v350_v18 = vpop.trf.xlu0 }
 0x1ba   : > { %v1170_v19 = vcombine.low %v350_v18, %v350_v18  ;;  %v1171_v20 = vcombine.high %v350_v18, %v350_v18 }
 0x1bc   : > { %418 = vxpose.xlu1.c.b16.start.end [1/1] (short) (narrow) %v1169_v17, 16  ;;  %v460_v21 = vsel %vm458_vm2, %v1170_v19, 0  ;;  %v506_v22 = vsel %vm458_vm2, %v1171_v20, 0 }
 0x1bd   : > { %1227 = vmatpush3.bf16.msra.mxu1 %v460_v21  ;;  %v351_v23 = vpop.trf.xlu0 }
 0x1be   : > { %v1172_v24 = vcombine.low %v351_v23, %v351_v23  ;;  %v1173_v25 = vcombine.high %v351_v23, %v351_v23  ;;  %1232 = vmatprep.subr.bf16.mxu1 %v1537_v0 }
 0x1c0   : > { %v552_v26 = vsel %vm458_vm2, %v1172_v24, 0  ;;  %v598_v27 = vsel %vm458_vm2, %v1173_v25, 0 }
 0x1c1   : > { %1239 = vmatpush3.bf16.msra.mxu0 %v552_v26  ;;  %v352_v28 = vpop.trf.xlu0 }
 0x1c2   : > { %1250 = vmatprep.subr.bf16.mxu0 %v1537_v0  ;;  %v1174_v32 = vcombine.low %v352_v28, %v352_v28  ;;  %v1175_v35 = vcombine.high %v352_v28, %v352_v28 }
 0x1c4   : > { %v704_v34 = vsel %vm454_vm3, %v1174_v32, 0  ;;  %v750_v37 = vsel %vm454_vm3, %v1175_v35, 0 }
 0x1c5   : > { %v1769_v29 = vpop.trf.xlu0 }
 0x1c6   : > { %v1176_v25 = vcombine.low %v1769_v29, %v1769_v29 }
 0x21a   : > { %v394_v30 = vpop.trf.xlu1  ;;  %v378_v31 = vpop.trf.xlu0 }
 0x21b   : > { %1229 = vmatmul.mubr.msk.bf16.vlgmr.msra.gmra.mrb[0].mxu1 %vm454_vm3, %v378_v31 }
 0x21c   : > { %1233 = vmatpush3.bf16.msra.mxu1 %v506_v22  ;;  %1234 = vmatprep.mubr.msk.bf16.mxu1 %vm1538_vm0, %v1537_v0 }
 0x21d   : > { %1244 = vmatprep.subr.bf16.mxu1 %v1537_v0 }
 0x21e   : > { %v410_v33 = vpop.trf.xlu1 }
 0x21f   : > { %1241 = vmatmul.mubr.msk.bf16.vlgmr.msra.gmra.mrb[4].mxu0 %vm454_vm3, %v410_v33 }
 0x220   : > { %1251 = vmatpush3.bf16.xpose.msra.mxu0 %v704_v34  ;;  %1252 = vmatprep.mubr.msk.bf16.mxu0 %vm1538_vm0, %v1537_v0  ;;  %v796_v34 = vsel %vm454_vm3, %v1176_v25, 0 }
 0x221   : > { %1262 = vmatprep.subr.bf16.mxu0 %v1537_v0 }
 0x222   : > { %v426_v36 = vpop.trf.xlu1 }
 0x223   : > { %1235 = vmatmul.mubr.msk.bf16.vlgmr.msra.gmra.mrb[4].mxu1 %vm454_vm3, %v394_v30 }
 0x224   : > { %1245 = vmatpush3.bf16.msra.mxu1 %v598_v27  ;;  %1246 = vmatprep.mubr.msk.bf16.mxu1 %vm1538_vm0, %v1537_v0 }
 0x225   : > { %1256 = vmatprep.subr.bf16.mxu1 %v1537_v0 }
 0x22b   : > { %1247 = vmatmul.mubr.msk.bf16.vlgmr.msra.gmra.mrb[8].mxu1 %vm454_vm3, %v426_v36 }
 0x22c   : > { %1258 = vmatprep.mubr.msk.bf16.mxu1 %vm1538_vm0, %v1537_v0 }
 0x22d   : > { %1257 = vmatpush3.bf16.xpose.msra.mxu1 %v750_v37  ;;  %v1177_v37 = vcombine.high %v1769_v29, %v1769_v29 }
 0x22e   : > { %1268 = vmatprep.subr.bf16.mxu1 %v1537_v0 }
 0x2ee   : > { %v496_v38 = vpop.f32.mrb[0].mxu1 }
 0x2ef   : > { %v1230_v39 = vpop.f32.mrb[1].mxu1  ;;  %v640_v40 = vsel %vm454_vm3, %v496_v38, -inf }
 0x2f0   : > { %641 = vmax.xlane.f32.xlu1 %v640_v40  ;;  %v499_v41 = vpop.f32.mrb[2].mxu1 }
 0x2f1   : > { %v1231_v42 = vpop.f32.mrb[3].mxu1 }
 0x2f2   : > { %v588_v43 = vpop.f32.mrb[4].mxu0 }
 0x2f3   : > { %v646_v44 = vsel %vm454_vm3, %v588_v43, -inf  ;;  %v1242_v45 = vpop.f32.mrb[5].mxu0 }
 0x2f4   : > { %647 = vmax.xlane.f32.xlu1 %v646_v44  ;;  %v591_v46 = vpop.f32.mrb[6].mxu0  ;;  %v842_v44 = vsel %vm454_vm3, %v1177_v37, 0 }
 0x2f5   : > { %v1243_v47 = vpop.f32.mrb[7].mxu0 }
 0x2f6   : > { %v542_v48 = vpop.f32.mrb[4].mxu1  ;;  %v1356_v47 = vld [vmem:[#allocation7] sm:$0xff]  }
 0x2f7   : > { %v1236_v49 = vpop.f32.mrb[5].mxu1  ;;  %v643_v50 = vsel %vm454_vm3, %v542_v48, -inf }
 0x2f8   : > { %644 = vmax.xlane.f32.xlu0 %v643_v50  ;;  %v545_v51 = vpop.f32.mrb[6].mxu1 }
 0x2f9   : > { %v1237_v52 = vpop.f32.mrb[7].mxu1 }
 0x2fe   : > { %v634_v53 = vpop.f32.mrb[8].mxu1 }
 0x2ff   : > { %v1248_v54 = vpop.f32.mrb[9].mxu1  ;;  %v649_v55 = vsel %vm454_vm3, %v634_v53, -inf }
 0x300   : > { %v637_v56 = vpop.f32.mrb[10].mxu1  ;;  %650 = vmax.xlane.f32.xlu1 %v649_v55 }
 0x301   : > { %v1249_v57 = vpop.f32.mrb[11].mxu1 }
 0x37d   : > { %v642_v58 = vpop.xlane.xlu1 %641 }
 0x37e   : > { %v652_v59 = vsub.f32 %v496_v38, %v642_v58 }
 0x380   : > { %v656_v60 = vmul.f32 1.442695, %v652_v59 }
 0x381   : > { %v648_v61 = vpop.xlane.xlu1 %647 }
 0x382   : > { %1358 = vpow2.f32 %v656_v60  ;;  %v654_v62 = vsub.f32 %v588_v43, %v648_v61 }
 0x384   : > { %v660_v63 = vmul.f32 1.442695, %v654_v62 }
 0x385   : > { %v645_v1 = vpop.xlane.xlu0 %644 }
 0x386   : > { %1360 = vpow2.f32 %v660_v63  ;;  %v653_v2 = vsub.f32 %v542_v48, %v645_v1  ;;  %v1357_v48 = vld [vmem:[#allocation7 + $0x8] sm:$0xff]  }
 0x388   : > { %v658_v3 = vmul.f32 1.442695, %v653_v2 }
 0x38a   : > { %1362 = vpow2.f32 %v658_v3 }
 0x38c   : > { %v1359_v4 = vpop.eup %1358 }
 0x38d   : > { %v651_v5 = vpop.xlane.xlu1 %650  ;;  %v664_v6 = vsel %vm454_vm3, %v1359_v4, 0.0 }
 0x38e   : > { %v655_v7 = vsub.f32 %v634_v53, %v651_v5  ;;  %665 = vadd.xlane.f32.xlu1 %v664_v6 }
 0x390   : > { %v1361_v8 = vpop.eup %1360  ;;  %v662_v9 = vmul.f32 1.442695, %v655_v7 }
 0x391   : > { %v670_v10 = vsel %vm454_vm3, %v1361_v8, 0.0 }
 0x392   : > { %1364 = vpow2.f32 %v662_v9  ;;  %671 = vadd.xlane.f32.xlu0 %v670_v10 }
 0x394   : > { %v1363_v11 = vpop.eup %1362 }
 0x395   : > { %v667_v12 = vsel %vm454_vm3, %v1363_v11, 0.0 }
 0x396   : > { %668 = vadd.xlane.f32.xlu1 %v667_v12  ;;  %v1188_v12 = vld [vmem:[%s1874_s4] ss:$0 sm:$0xff] }
 0x39c   : > { %v1365_v13 = vpop.eup %1364 }
 0x39d   : > { %v673_v14 = vsel %vm454_vm3, %v1365_v13, 0.0 }
 0x39e   : > { %674 = vadd.xlane.f32.xlu1 %v673_v14 }
 0x41b   : > { %v666_v15 = vpop.xlane.xlu1 %665 }
 0x41c   : > { %1366 = vrcp.f32 %v666_v15 }
 0x41f   : > { %v672_v16 = vpop.xlane.xlu0 %671 }
 0x420   : > { %1368 = vrcp.f32 %v672_v16 }
 0x423   : > { %v669_v17 = vpop.xlane.xlu1 %668 }
 0x424   : > { %1370 = vrcp.f32 %v669_v17 }
 0x426   : > { %v1367_v18 = vpop.eup %1366 }
 0x427   : > { %v680_v19 = vmul.f32 %v1367_v18, %v666_v15 }
 0x429   : > { %v684_v20 = vsub.f32 2.0, %v680_v19 }
 0x42a   : > { %v1369_v21 = vpop.eup %1368 }
 0x42b   : > { %v688_v22 = vmul.f32 %v1367_v18, %v684_v20  ;;  %v682_v23 = vmul.f32 %v1369_v21, %v672_v16  ;;  %v675_v24 = vpop.xlane.xlu1 %674 }
 0x42c   : > { %1372 = vrcp.f32 %v675_v24 }
 0x42d   : > { %v692_v26 = vmul.f32 %v1359_v4, %v688_v22  ;;  %v686_v27 = vsub.f32 2.0, %v682_v23 }
 0x42e   : > { %v1371_v28 = vpop.eup %1370 }
 0x42f   : > { %v696_v30 = vpack.c.bf16 %v692_v26, %v692_v26  ;;  %v690_v31 = vmul.f32 %v1369_v21, %v686_v27  ;;  %v681_v32 = vmul.f32 %v1371_v28, %v669_v17 }
 0x431   : > { %v685_v33 = vsub.f32 2.0, %v681_v32  ;;  %1253 = vmatmul.mubr.msk.bf16.vlgmr.msra.gmra.mrb[8].mxu0 %vm454_vm3, %v696_v30  ;;  %v694_v35 = vmul.f32 %v1361_v8, %v690_v31 }
 0x432   : > { %1263 = vmatpush3.bf16.xpose.msra.mxu0 %v796_v34  ;;  %1264 = vmatprep.mubr.msk.bf16.mxu0 %vm1538_vm0, %v1537_v0 }
 0x433   : > { %v689_v36 = vmul.f32 %v1371_v28, %v685_v33  ;;  %1274 = vmatprep.subr.bf16.mxu0 %v1537_v0  ;;  %v698_v40 = vpack.c.bf16 %v694_v35, %v694_v35 }
 0x435   : > { %v693_v38 = vmul.f32 %v1363_v11, %v689_v36 }
 0x436   : > { %v1373_v39 = vpop.eup %1372 }
 0x437   : > { %v697_v41 = vpack.c.bf16 %v693_v38, %v693_v38  ;;  %v683_v42 = vmul.f32 %v1373_v39, %v675_v24 }
 0x439   : > { %v687_v43 = vsub.f32 2.0, %v683_v42  ;;  %1259 = vmatmul.mubr.msk.bf16.vlgmr.msra.gmra.mrb[12].mxu1 %vm454_vm3, %v697_v41  ;;  %1265 = vmatmul.mubr.msk.bf16.vlgmr.msra.gmra.mrb[12].mxu0 %vm454_vm3, %v698_v40 }
 0x43a   : > { %1269 = vmatpush3.bf16.xpose.msra.mxu1 %v842_v44  ;;  %1270 = vmatprep.mubr.msk.bf16.mxu1 %vm1538_vm0, %v1537_v0 }
 0x43b   : > { %v691_v45 = vmul.f32 %v1373_v39, %v687_v43  ;;  %1278 = vmatprep.mubr.msk.bf16.mxu0 %vm1538_vm0, %v1537_v0  ;;  %1275 = vmatpush3.bf16.msra.mxu0 %v1356_v47 }
 0x43c   : > { %1276 = vmatprep.subr.bf16.mxu0 %v1537_v0 }
 0x43d   : > { %v695_v29 = vmul.f32 %v1365_v13, %v691_v45 }
 0x43f   : > { %v699_v46 = vpack.c.bf16 %v695_v29, %v695_v29  ;;  %1277 = vmatpush3.bf16.msra.mxu0 %v1357_v48 }
 0x441   : > { %1271 = vmatmul.mubr.msk.bf16.vlgmr.msra.gmra.mrb[16].mxu1 %vm454_vm3, %v699_v46 }
 0x504   : > { %v740_v49 = vpop.f32.mrb[8].mxu0 }
 0x505   : > { %v884_v50 = vpack.c.bf16 %v740_v49, %v740_v49  ;;  %v1254_v51 = vpop.f32.mrb[9].mxu0 }
 0x506   : > { %v743_v52 = vpop.f32.mrb[10].mxu0 }
 0x507   : > { %888 = vxpose.xlu0.c.b16.start.end [1/1] (short) (narrow) %v884_v50, 16  ;;  %v1255_v53 = vpop.f32.mrb[11].mxu0 }
 0x50c   : > { %v786_v54 = vpop.f32.mrb[12].mxu1  ;;  %v832_v55 = vpop.f32.mrb[12].mxu0 }
 0x50d   : > { %v885_v56 = vpack.c.bf16 %v786_v54, %v786_v54  ;;  %v886_v57 = vpack.c.bf16 %v832_v55, %v832_v55  ;;  %v1260_v58 = vpop.f32.mrb[13].mxu1  ;;  %v1266_v59 = vpop.f32.mrb[13].mxu0 }
 0x50e   : > { %v789_v60 = vpop.f32.mrb[14].mxu1  ;;  %v835_v61 = vpop.f32.mrb[14].mxu0 }
 0x50f   : > { %904 = vxpose.xlu1.c.b16.start.end [1/1] (short) (narrow) %v885_v56, 16  ;;  %v1261_v62 = vpop.f32.mrb[15].mxu1  ;;  %920 = vxpose.xlu0.c.b16.start.end [1/1] (short) (narrow) %v886_v57, 16  ;;  %v1267_v63 = vpop.f32.mrb[15].mxu0 }
 0x514   : > { %v878_v0 = vpop.f32.mrb[16].mxu1 }
 0x515   : > { %v887_v1 = vpack.c.bf16 %v878_v0, %v878_v0  ;;  %v1272_v2 = vpop.f32.mrb[17].mxu1 }
 0x516   : > { %v881_v3 = vpop.f32.mrb[18].mxu1 }
 0x517   : > { %936 = vxpose.xlu1.c.b16.start.end [1/1] (short) (narrow) %v887_v1, 16  ;;  %v1273_v4 = vpop.f32.mrb[19].mxu1 }
 0x56d   : > { %v896_v5 = vpop.trf.xlu0 }
 0x575   : > { %v912_v6 = vpop.trf.xlu1  ;;  %v928_v8 = vpop.trf.xlu0 }
 0x576   : > { %v1186_v7 = vcombine.low %v896_v5, %v912_v6 }
 0x578   : > { %964 = vxpose.xlu0.c.b16.start [1/2] (short) (narrow) %v1186_v7, 16 }
 0x57d   : > { %v944_v9 = vpop.trf.xlu1 }
 0x57e   : > { %v1187_v10 = vcombine.low %v928_v8, %v944_v9 }
 0x580   : > { %965 = vxpose.xlu0.c.b16.end [2/2] (short) (narrow) %v1187_v10, 16 }
 0x5e2   : > { %v972_v11 = vpop.trf.xlu0 }
 0x5e3   : > { %1279 = vmatmul.mubr.msk.bf16.vlgmr.msra.gmra.mrb[16].mxu0 %vm295_vm1, %v972_v11 }
 0x6b6   : > { %v1040_v13 = vpop.f32.mrb[16].mxu0 }
 0x6b7   : > { %v1041_v14 = vadd.f32 %v1188_v12, %v1040_v13  ;;  %v1280_v15 = vpop.f32.mrb[17].mxu0 }
 0x6b8   : > { %v1043_v16 = vpop.f32.mrb[18].mxu0 }
 0x6b9   : > { %v1281_v17 = vpop.f32.mrb[19].mxu0  ;;  %1046 = vst.msk [vmem:[%s268_s28] sm:$0xff] %vm295_vm1, %v1041_v14 }
 0x6ba   : > { %1473 = shalt.err (!%p1470_p2)
}
 0x6bb   : > { %s1474_s12 = scalar_lea.hbm %s1825_s15, 128  ;;  %s1478_s26 = scalar_lea.hbm %s1875_s5, 256 }
 0x6bc   : > { %p1475_p13 = scmp.ne.s32.totalorder %s1825_s15, %s1474_s12  ;;  %p1479_p4 = scmp.lt.u32.totalorder %s1825_s15, %s1875_s5 }
 0x6bd   : > { %p1480_p5 = scmp.lt.u32.totalorder %s1478_s26, %s1474_s12  ;;  %p1482_p11 = scmp.lt.u32.totalorder %s1474_s12, %s1825_s15 }
 0x6be   : > { %p1476_p6 = pnand %p1475_p13, %p1889_p0 }
 0x6bf   : > { %p1481_p8 = por %p1480_p5, %p1479_p4 }
 0x6c0   : > { %p1477_p10 = pneg %p1476_p6 }
 0x6c1   : > { %p1483_p1 = por %p1482_p11, %p1481_p8 }
 0x6c3   : > { %p1484_p3 = pnand %p1483_p1, %p1477_p10 }
 0x6c5   : > { %1487 = shalt.err (!%p1484_p3)
}
 0x6c6   : > { %1292 = dma.vmem_to_hbm [thread:$0]  (%p1889_p0), %s1827_s7, 128, %s1825_s15, %s1048_s22  }
 0x6c7 PF: > { %s1073_s11 = sand.u32 1, %s1518_s18   ;;  %p1890_p7 = scmp.ne.s32.totalorder %s1880_s25, 0 }
 0x6c8   : > { %p1891_p9 = scmp.ge.s32.totalorder %s1530_s21, 2  ;;  %s1074_s28 = scalar_lea.sflag [#allocation4], %s1073_s11 }
 0x6ca   : > { %p1306_p12 = pnand %p1891_p9, %p1890_p7 }
 0x6cc   : > { %1513 = dma.done.wait (!%p1306_p12), %s1074_s28, 128  }
 0x6cd   : > { %1515 = vsyncadd (!%p1306_p12), %s1074_s28, 4294967168  ;;  %p19_p2 = scmp.ge.s32.totalorder %s1680_s14, 4   ;;  %s1892_s18 = smov %s1522_s19 }
 0x6ce   : > { %s1893_s19 = smov %s1526_s20  ;;  %s1894_s20 = smov %s1696_s27 }
 0x6cf   : > { %s1895_s21 = smov %s1680_s14  ;;  %21 = sbr.rel (!%p19_p2) target bundleno = 6 (0x6), region = 93 }
 0x6d6   :  { %1079 = vsyncpa [#allocation3], 1 }
 0x6d7   :  { %1081 = vsyncpa [#allocation3 + $0x1], 1 }
 0x6d8   :  { %1082 = vsyncpa [#allocation6], 1 }
 0x6d9   :  { %1083 = vsyncpa [#allocation4], 1 }
 0x6da   :  { %1085 = vsyncpa [#allocation4 + $0x1], 1 }

</bundles_post_ra>
